<compile_context>
chip_gen: v7x
topology: tpu7x:2x2x1
jax: 0.10.0
libtpu: 0.0.40
codegen_flags: <defaults>
</compile_context>

<pallas_src>
import jax
import jax.numpy as jnp
import numpy as np
from jax.experimental import pallas as pl
from jax.experimental.pallas import tpu as pltpu

C_IN, L_IN = 4, 29
C1, C2, C3 = 16, 32, 32
L1, L2, L3 = 29, 27, 9
FC_IN, FC_HID, FC_OUT = L3 * C3, 32, 2
OUT_PAD = 128                      # lane-dense output width (slice back to 2 in wrapper)
NEG_SLOPE = 0.01                   # torch.nn.LeakyReLU default negative_slope


def _leaky_relu(x):
    # Valid for NEG_SLOPE in [0, 1]; saves the compare of where(x>0, x, a*x).
    return jnp.maximum(x, NEG_SLOPE * x)


def _round_up(n, m):
    return ((n + m - 1) // m) * m


def fused_cnn_kernel(x_ref, w1_ref, b1_ref, w2_ref, b2_ref, w3_ref, b3_ref,
                     wf_ref, bf_ref, o_ref):
    """(B_TILE, 116) NCL-flattened input -> (B_TILE, 128) lane-padded logits.

    Four plain 2D matmuls (conv1, conv2, conv3, folded fc1@fc2); all conv/flatten
    structure lives in the precomputed weights.  Matmul operands are in
    w*_ref.dtype (bf16 by default); accumulation / bias / LeakyReLU are f32.
    """
    dt = w1_ref.dtype
    x = x_ref[...]                                                               # (bt, 116)
    y1 = _leaky_relu(jnp.dot(x, w1_ref[...],
                             preferred_element_type=jnp.float32) + b1_ref[...])  # (bt, 464)
    y2 = _leaky_relu(jnp.dot(y1.astype(dt), w2_ref[...],
                             preferred_element_type=jnp.float32) + b2_ref[...])  # (bt, 864)
    y3 = _leaky_relu(jnp.dot(y2.astype(dt), w3_ref[...],
                             preferred_element_type=jnp.float32) + b3_ref[...])  # (bt, 288)
    o_ref[...] = (jnp.dot(y3.astype(dt), wf_ref[...],
                          preferred_element_type=jnp.float32)
                  + bf_ref[...]).astype(o_ref.dtype)                             # (bt, 128)


def _fold_params(params, dtype):
    """Fold conv taps/stride, input layout, flatten order and fc1@fc2 into dense weights."""
    w1, b1 = params["w1"], params["b1"]          # (4,16),  (1,16)
    w2, b2 = params["w2"], params["b2"]          # (3,16,32), (1,32)
    w3, b3 = params["w3"], params["b3"]          # (3,32,32), (1,32)
    wf1, bf1 = params["wf1"], params["bf1"]      # (288,32), (1,32)
    wf2, bf2 = params["wf2"], params["bf2"]      # (32,2),  (1,2)

    # Conv1 (k=1): rows are NCL-flat features c*29+t, cols are t*16+o.  The
    # identity over t absorbs the NCL->channels-last transpose, so the wrapper
    # never makes an extra HBM pass over the input (only a free reshape).
    eye_t = jnp.eye(L_IN, dtype=jnp.float32)
    w1_big = (w1[:, None, None, :] * eye_t[None, :, :, None]).reshape(C_IN * L_IN, L1 * C1)

    # Conv2 (k=3, s=1): block-banded (464, 864); row t_in*16+i, col t_out*32+o,
    # nonzero iff t_in == t_out + k.
    w2_big = sum(jnp.kron(jnp.eye(L1, L2, k=-k, dtype=jnp.float32), w2[k]) for k in range(3))

    # Conv3 (k=3, s=3): block-banded (864, 288); row t_in*32+i, col j*32+o,
    # nonzero iff t_in == 3*j + k.
    r = jnp.arange(L2)[:, None]
    c = jnp.arange(L3)[None, :]
    w3_big = sum(jnp.kron((r == 3 * c + k).astype(jnp.float32), w3[k]) for k in range(3))

    # PyTorch flatten order on (B, C=32, L=9) is c*9+j; the kernel's natural
    # order is j*32+c, so permute wf1 rows once here.  Then fold the two Linear
    # layers (no nonlinearity between them -> exact in f32) and zero-pad the
    # output dimension to a full 128-lane width for unmasked stores.
    wf1_perm = wf1.reshape(C3, L3, FC_HID).transpose(1, 0, 2).reshape(FC_IN, FC_HID)
    wf_fold = wf1_perm.astype(jnp.float32) @ wf2.astype(jnp.float32)       # (288, 2)
    bf_fold = bf1.astype(jnp.float32) @ wf2.astype(jnp.float32) + bf2      # (1, 2)
    wf_pad = jnp.zeros((FC_IN, OUT_PAD), jnp.float32).at[:, :FC_OUT].set(wf_fold)
    bf_pad = jnp.zeros((1, OUT_PAD), jnp.float32).at[:, :FC_OUT].set(bf_fold)

    weights = [a.astype(dtype) for a in (w1_big, w2_big, w3_big, wf_pad)]
    biases = [jnp.tile(b1, (1, L1)).astype(jnp.float32),   # (1, 464), value b1[o] at t*16+o
              jnp.tile(b2, (1, L2)).astype(jnp.float32),   # (1, 864)
              jnp.tile(b3, (1, L3)).astype(jnp.float32),   # (1, 288)
              bf_pad]                                      # (1, 128), f32
    return weights, biases


def _choose_tile(B, block_b):
    """Batch tile (multiple of 8), tight padding, >=2 grid steps for v7x when B>=16."""
    block_b = max(8, _round_up(int(block_b), 8))
    min_tiles = 2 if B >= 16 else 1            # keep both v7x TensorCores busy
    n_tiles = max(pl.cdiv(B, block_b), min_tiles)
    bt = min(block_b, _round_up(pl.cdiv(B, n_tiles), 8))
    b_pad = _round_up(B, bt)
    return bt, b_pad


def simple_cnn_forward(x_ncl, params, *, block_b=1024, matmul_dtype=jnp.bfloat16):
    """Forward matching SimpleCNN(input_size=4) for x of shape (B, 4, 29)."""
    B = x_ncl.shape[0]
    bt, b_pad = _choose_tile(B, block_b)

    # Free reshape of the NCL input; feature index = c*29 + t (layout handled by w1_big).
    x_flat = x_ncl.reshape(B, C_IN * L_IN).astype(matmul_dtype)
    if b_pad != B:
        x_flat = jnp.pad(x_flat, ((0, b_pad - B), (0, 0)))

    (w1b, w2b, w3b, wfb), (b1b, b2b, b3b, bfb) = _fold_params(params, matmul_dtype)

    resident = pl.BlockSpec(memory_space=pltpu.MemorySpace.VMEM)   # whole array stays in VMEM
    out = pl.pallas_call(
        fused_cnn_kernel,
        out_shape=jax.ShapeDtypeStruct((b_pad, OUT_PAD), jnp.float32),
        grid=(b_pad // bt,),
        in_specs=[pl.BlockSpec((bt, C_IN * L_IN), lambda i: (i, 0))] + [resident] * 8,
        out_specs=pl.BlockSpec((bt, OUT_PAD), lambda i: (i, 0)),
        compiler_params=pltpu.CompilerParams(
            dimension_semantics=("parallel",),
            # 32 MiB is safe on v5e/v6e/v7x and comfortably fits bt=1024 in bf16.
            vmem_limit_bytes=32 * 1024 * 1024),
    )(x_flat, w1b, b1b, w2b, b2b, w3b, b3b, wfb, bfb)
    return out[:B, :FC_OUT]


def reference_forward(x_ncl, params):
    """Pure-JAX reference reproducing the PyTorch forward (NCL convs)."""
    def conv1d(x, w_oik, b, stride):
        y = jax.lax.conv_general_dilated(
            x, w_oik, window_strides=(stride,), padding="VALID",
            dimension_numbers=("NCH", "OIH", "NCH"))
        return y + b[None, :, None]

    w1_oik = jnp.transpose(params["w1"], (1, 0))[:, :, None]   # (16, 4, 1)
    w2_oik = jnp.transpose(params["w2"], (2, 1, 0))            # (32, 16, 3)
    w3_oik = jnp.transpose(params["w3"], (2, 1, 0))            # (32, 32, 3)
    y = jnp.where(conv1d(x_ncl, w1_oik, params["b1"][0], 1) > 0,
                  conv1d(x_ncl, w1_oik, params["b1"][0], 1),
                  NEG_SLOPE * conv1d(x_ncl, w1_oik, params["b1"][0], 1))
    y = _leaky_relu(conv1d(x_ncl, w1_oik, params["b1"][0], 1))
    y = _leaky_relu(conv1d(y, w2_oik, params["b2"][0], 1))
    y = _leaky_relu(conv1d(y, w3_oik, params["b3"][0], 3))
    flat = y.reshape(y.shape[0], -1)                           # PyTorch flatten order (c*9+j)
    h = flat @ params["wf1"] + params["bf1"][0]
    return h @ params["wf2"] + params["bf2"][0]


if __name__ == "__main__":
    key = jax.random.PRNGKey(0)
    keys = jax.random.split(key, 12)

    params = {
        "w1":  0.2 * jax.random.normal(keys[1], (C_IN, C1), jnp.float32),
        "b1":  0.1 * jax.random.normal(keys[2], (1, C1), jnp.float32),
        "w2":  0.2 * jax.random.normal(keys[3], (3, C1, C2), jnp.float32),
        "b2":  0.1 * jax.random.normal(keys[4], (1, C2), jnp.float32),
        "w3":  0.2 * jax.random.normal(keys[5], (3, C2, C3), jnp.float32),
        "b3":  0.1 * jax.random.normal(keys[6], (1, C3), jnp.float32),
        "wf1": 0.1 * jax.random.normal(keys[7], (FC_IN, FC_HID), jnp.float32),
        "bf1": 0.1 * jax.random.normal(keys[8], (1, FC_HID), jnp.float32),
        "wf2": 0.1 * jax.random.normal(keys[9], (FC_HID, FC_OUT), jnp.float32),
        "bf2": 0.1 * jax.random.normal(keys[10], (1, FC_OUT), jnp.float32),
    }

    # Primary check: small batch, production (bf16) path.
    B = 2
    x = jax.random.normal(keys[0], (B, C_IN, L_IN), jnp.float32)   # PyTorch NCL input
    out = jax.block_until_ready(simple_cnn_forward(x, params))
    ref = jax.block_until_ready(reference_forward(x, params))
    assert out.shape == (B, FC_OUT)
    np.testing.assert_allclose(np.asarray(out), np.asarray(ref), rtol=2e-2, atol=2e-2)

    # Exactness check of the weight folding (f32 matmul path).
    out_f32 = jax.block_until_ready(simple_cnn_forward(x, params, matmul_dtype=jnp.float32))
    np.testing.assert_allclose(np.asarray(out_f32), np.asarray(ref), rtol=2e-2, atol=2e-2)

    # Multi-tile / padded-tail path (grid > 1, bt forced to a multiple of 8).
    B2 = 20
    x2 = jax.random.normal(keys[11], (B2, C_IN, L_IN), jnp.float32)
    out2 = jax.block_until_ready(simple_cnn_forward(x2, params, block_b=8))
    ref2 = jax.block_until_ready(reference_forward(x2, params))
    assert out2.shape == (B2, FC_OUT)
    np.testing.assert_allclose(np.asarray(out2), np.asarray(ref2), rtol=2e-2, atol=2e-2)

    print("KERNEL_OK")
</pallas_src>

<mosaic_0001>
module attributes {stable_mosaic.version = 11 : i64} {
  func.func @fused_cnn_kernel(%arg0: i32, %arg1: memref<8x116xbf16, #tpu.memory_space<vmem>>, %arg2: memref<116x464xbf16, #tpu.memory_space<vmem>>, %arg3: memref<1x464xf32, #tpu.memory_space<vmem>>, %arg4: memref<464x864xbf16, #tpu.memory_space<vmem>>, %arg5: memref<1x864xf32, #tpu.memory_space<vmem>>, %arg6: memref<864x288xbf16, #tpu.memory_space<vmem>>, %arg7: memref<1x288xf32, #tpu.memory_space<vmem>>, %arg8: memref<288x128xbf16, #tpu.memory_space<vmem>>, %arg9: memref<1x128xf32, #tpu.memory_space<vmem>>, %arg10: memref<8x128xf32, #tpu.memory_space<vmem>>) attributes {dimension_semantics = [#tpu.dimension_semantics<parallel>], iteration_bounds = array<i64: 1>, scalar_prefetch = 0 : i64, scratch_operands = 0 : i64, tpu.core_type = #tpu.core_type<tc>, window_params = [{transform_indices = @transform_0, window_bounds = array<i64: 8, 116>}, {pipeline_mode = #tpu.pipeline_mode<synchronous>, transform_indices = @transform_1, window_bounds = array<i64: 116, 464>}, {pipeline_mode = #tpu.pipeline_mode<synchronous>, transform_indices = @transform_2, window_bounds = array<i64: 1, 464>}, {pipeline_mode = #tpu.pipeline_mode<synchronous>, transform_indices = @transform_3, window_bounds = array<i64: 464, 864>}, {pipeline_mode = #tpu.pipeline_mode<synchronous>, transform_indices = @transform_4, window_bounds = array<i64: 1, 864>}, {pipeline_mode = #tpu.pipeline_mode<synchronous>, transform_indices = @transform_5, window_bounds = array<i64: 864, 288>}, {pipeline_mode = #tpu.pipeline_mode<synchronous>, transform_indices = @transform_6, window_bounds = array<i64: 1, 288>}, {pipeline_mode = #tpu.pipeline_mode<synchronous>, transform_indices = @transform_7, window_bounds = array<i64: 288, 128>}, {pipeline_mode = #tpu.pipeline_mode<synchronous>, transform_indices = @transform_8, window_bounds = array<i64: 1, 128>}, {transform_indices = @transform_9, window_bounds = array<i64: 8, 128>}]} {
    %c0 = arith.constant 0 : index
    %c0_0 = arith.constant 0 : index
    %0 = vector.load %arg1[%c0, %c0_0] : memref<8x116xbf16, #tpu.memory_space<vmem>>, vector<8x116xbf16>
    %c0_1 = arith.constant 0 : index
    %c0_2 = arith.constant 0 : index
    %1 = vector.load %arg2[%c0_1, %c0_2] : memref<116x464xbf16, #tpu.memory_space<vmem>>, vector<116x464xbf16>
    %cst = arith.constant dense<0.000000e+00> : vector<8x464xf32>
    %2 = tpu.matmul %0, %1, %cst {dimension_numbers = #tpu.dot_dimension_numbers<[1], [0], [0], [1], [0, 0, 1, 1], [], []>} : vector<8x116xbf16>, vector<116x464xbf16>, vector<8x464xf32> -> vector<8x464xf32>
    %c0_3 = arith.constant 0 : index
    %c0_4 = arith.constant 0 : index
    %3 = vector.load %arg3[%c0_3, %c0_4] : memref<1x464xf32, #tpu.memory_space<vmem>>, vector<1x464xf32>
    %4 = vector.broadcast %3 : vector<1x464xf32> to vector<8x464xf32>
    %5 = arith.addf %2, %4 : vector<8x464xf32>
    %cst_5 = arith.constant 0.00999999977 : f32
    %6 = vector.broadcast %cst_5 : f32 to vector<8x464xf32>
    %7 = arith.mulf %6, %5 : vector<8x464xf32>
    %8 = arith.maximumf %5, %7 : vector<8x464xf32>
    %9 = arith.truncf %8 : vector<8x464xf32> to vector<8x464xbf16>
    %c0_6 = arith.constant 0 : index
    %c0_7 = arith.constant 0 : index
    %10 = vector.load %arg4[%c0_6, %c0_7] : memref<464x864xbf16, #tpu.memory_space<vmem>>, vector<464x864xbf16>
    %cst_8 = arith.constant dense<0.000000e+00> : vector<8x864xf32>
    %11 = tpu.matmul %9, %10, %cst_8 {dimension_numbers = #tpu.dot_dimension_numbers<[1], [0], [0], [1], [0, 0, 1, 1], [], []>} : vector<8x464xbf16>, vector<464x864xbf16>, vector<8x864xf32> -> vector<8x864xf32>
    %c0_9 = arith.constant 0 : index
    %c0_10 = arith.constant 0 : index
    %12 = vector.load %arg5[%c0_9, %c0_10] : memref<1x864xf32, #tpu.memory_space<vmem>>, vector<1x864xf32>
    %13 = vector.broadcast %12 : vector<1x864xf32> to vector<8x864xf32>
    %14 = arith.addf %11, %13 : vector<8x864xf32>
    %cst_11 = arith.constant 0.00999999977 : f32
    %15 = vector.broadcast %cst_11 : f32 to vector<8x864xf32>
    %16 = arith.mulf %15, %14 : vector<8x864xf32>
    %17 = arith.maximumf %14, %16 : vector<8x864xf32>
    %18 = arith.truncf %17 : vector<8x864xf32> to vector<8x864xbf16>
    %c0_12 = arith.constant 0 : index
    %c0_13 = arith.constant 0 : index
    %19 = vector.load %arg6[%c0_12, %c0_13] : memref<864x288xbf16, #tpu.memory_space<vmem>>, vector<864x288xbf16>
    %cst_14 = arith.constant dense<0.000000e+00> : vector<8x288xf32>
    %20 = tpu.matmul %18, %19, %cst_14 {dimension_numbers = #tpu.dot_dimension_numbers<[1], [0], [0], [1], [0, 0, 1, 1], [], []>} : vector<8x864xbf16>, vector<864x288xbf16>, vector<8x288xf32> -> vector<8x288xf32>
    %c0_15 = arith.constant 0 : index
    %c0_16 = arith.constant 0 : index
    %21 = vector.load %arg7[%c0_15, %c0_16] : memref<1x288xf32, #tpu.memory_space<vmem>>, vector<1x288xf32>
    %22 = vector.broadcast %21 : vector<1x288xf32> to vector<8x288xf32>
    %23 = arith.addf %20, %22 : vector<8x288xf32>
    %cst_17 = arith.constant 0.00999999977 : f32
    %24 = vector.broadcast %cst_17 : f32 to vector<8x288xf32>
    %25 = arith.mulf %24, %23 : vector<8x288xf32>
    %26 = arith.maximumf %23, %25 : vector<8x288xf32>
    %27 = arith.truncf %26 : vector<8x288xf32> to vector<8x288xbf16>
    %c0_18 = arith.constant 0 : index
    %c0_19 = arith.constant 0 : index
    %28 = vector.load %arg8[%c0_18, %c0_19] : memref<288x128xbf16, #tpu.memory_space<vmem>>, vector<288x128xbf16>
    %cst_20 = arith.constant dense<0.000000e+00> : vector<8x128xf32>
    %29 = tpu.matmul %27, %28, %cst_20 {dimension_numbers = #tpu.dot_dimension_numbers<[1], [0], [0], [1], [0, 0, 1, 1], [], []>} : vector<8x288xbf16>, vector<288x128xbf16>, vector<8x128xf32> -> vector<8x128xf32>
    %c0_21 = arith.constant 0 : index
    %c0_22 = arith.constant 0 : index
    %30 = vector.load %arg9[%c0_21, %c0_22] : memref<1x128xf32, #tpu.memory_space<vmem>>, vector<1x128xf32>
    %31 = vector.broadcast %30 : vector<1x128xf32> to vector<8x128xf32>
    %32 = arith.addf %29, %31 : vector<8x128xf32>
    %c0_23 = arith.constant 0 : index
    %c0_24 = arith.constant 0 : index
    %33 = vector.load %arg10[%c0_23, %c0_24] : memref<8x128xf32, #tpu.memory_space<vmem>>, vector<8x128xf32>
    tpu.vector_store %arg10[%c0_23, %c0_24], %32 {strides = array<i32>} : memref<8x128xf32, #tpu.memory_space<vmem>>, vector<8x128xf32>,
    return
  }
  func.func @transform_0(%arg0: i32) -> (i32, i32) {
    %c0_i32 = arith.constant 0 : i32
    %c0_i32_0 = arith.constant 0 : i32
    return %arg0, %c0_i32 : i32, i32
  }
  func.func @transform_1(%arg0: i32) -> (i32, i32) {
    %c0_i32 = arith.constant 0 : i32
    %c0_i32_0 = arith.constant 0 : i32
    %c0_i32_1 = arith.constant 0 : i32
    return %c0_i32, %c0_i32_0 : i32, i32
  }
  func.func @transform_2(%arg0: i32) -> (i32, i32) {
    %c0_i32 = arith.constant 0 : i32
    %c0_i32_0 = arith.constant 0 : i32
    %c0_i32_1 = arith.constant 0 : i32
    return %c0_i32, %c0_i32_0 : i32, i32
  }
  func.func @transform_3(%arg0: i32) -> (i32, i32) {
    %c0_i32 = arith.constant 0 : i32
    %c0_i32_0 = arith.constant 0 : i32
    %c0_i32_1 = arith.constant 0 : i32
    return %c0_i32, %c0_i32_0 : i32, i32
  }
  func.func @transform_4(%arg0: i32) -> (i32, i32) {
    %c0_i32 = arith.constant 0 : i32
    %c0_i32_0 = arith.constant 0 : i32
    %c0_i32_1 = arith.constant 0 : i32
    return %c0_i32, %c0_i32_0 : i32, i32
  }
  func.func @transform_5(%arg0: i32) -> (i32, i32) {
    %c0_i32 = arith.constant 0 : i32
    %c0_i32_0 = arith.constant 0 : i32
    %c0_i32_1 = arith.constant 0 : i32
    return %c0_i32, %c0_i32_0 : i32, i32
  }
  func.func @transform_6(%arg0: i32) -> (i32, i32) {
    %c0_i32 = arith.constant 0 : i32
    %c0_i32_0 = arith.constant 0 : i32
    %c0_i32_1 = arith.constant 0 : i32
    return %c0_i32, %c0_i32_0 : i32, i32
  }
  func.func @transform_7(%arg0: i32) -> (i32, i32) {
    %c0_i32 = arith.constant 0 : i32
    %c0_i32_0 = arith.constant 0 : i32
    %c0_i32_1 = arith.constant 0 : i32
    return %c0_i32, %c0_i32_0 : i32, i32
  }
  func.func @transform_8(%arg0: i32) -> (i32, i32) {
    %c0_i32 = arith.constant 0 : i32
    %c0_i32_0 = arith.constant 0 : i32
    %c0_i32_1 = arith.constant 0 : i32
    return %c0_i32, %c0_i32_0 : i32, i32
  }
  func.func @transform_9(%arg0: i32) -> (i32, i32) {
    %c0_i32 = arith.constant 0 : i32
    %c0_i32_0 = arith.constant 0 : i32
    return %arg0, %c0_i32 : i32, i32
  }
}

</mosaic_0001>

<bundles_post_ra>
// kernel: tpu_custom_call.1
= control target key start
LH: loop header
LB: loop body
LE: loop exit
PB: predicated region body
PF: predicated region fallthrough
CT: control target
= control target key end

     0   :  { %v4897_v2 = vmov 0   ;;  %vm241_vm0 = vcmask 1041408   ;;  %vm237_vm1 = vcmask 949248   ;;  %s6339_s0 = inlined_call_operand.vmem [shape: bf16[8,116], index: 0, kind: input, shape index: {}]   ;;  %s6340_s1 = inlined_call_operand.vmem [shape: bf16[116,464], index: 1, kind: input, shape index: {}]   ;;  %s6341_s2 = inlined_call_operand.vmem [shape: f32[1,464], index: 2, kind: input, shape index: {}]   ;;  %s6342_s3 = inlined_call_operand.vmem [shape: bf16[464,864], index: 3, kind: input, shape index: {}]   ;;  %s6343_s4 = inlined_call_operand.vmem [shape: f32[1,864], index: 4, kind: input, shape index: {}]   ;;  %s6344_s5 = inlined_call_operand.vmem [shape: bf16[864,288], index: 5, kind: input, shape index: {}]   ;;  %s6345_s6 = inlined_call_operand.vmem [shape: f32[1,288], index: 6, kind: input, shape index: {}]   ;;  %s6346_s7 = inlined_call_operand.vmem [shape: bf16[288,128], index: 7, kind: input, shape index: {}]   ;;  %s6347_s8 = inlined_call_operand.vmem [shape: f32[1,128], index: 8, kind: input, shape index: {}]   ;;  %s6348_s9 = inlined_call_operand.hbm [shape: f32[8,128], index: 9, kind: output, shape index: {}]  }
   0x1   :  { %v4303_v0 = vld [vmem:[%s6340_s1 + $0x4] ss:$16 sps:$4 sm:$0xff]   ;;  %v4305_v1 = vld [vmem:[%s6340_s1] ss:$16 sps:$4 sm:$0xff]   ;;  %286 = vmatprep.mubr.bf16.mxu0 %v4897_v2  ;;  %327 = vmatprep.mubr.bf16.mxu1 %v4897_v2  ;;  %v4326_v9 = vld [vmem:[%s6340_s1 + $0xc] ss:$16 sps:$4 sm:$0xff]  }
   0x2   :  { %254 = vmatprep.subr.bf16.mxu0 %v4303_v0  ;;  %v4306_v3 = vld [vmem:[%s6340_s1 + $0x24] ss:$16 sps:$4 sm:$0xff]   ;;  %v4308_v4 = vld [vmem:[%s6340_s1 + $0x20] ss:$16 sps:$4 sm:$0xff]   ;;  %v4328_v10 = vld [vmem:[%s6340_s1 + $0x8] ss:$16 sps:$4 sm:$0xff]   ;;  %295 = vmatprep.subr.bf16.mxu1 %v4326_v9 }
   0x3   :  { %255 = vmatpush1.bf16.msra.mxu0 %v4305_v1  ;;  %v4309_v5 = vld [vmem:[%s6340_s1 + $0x44] ss:$16 sps:$4 sm:$0xff]   ;;  %v4311_v6 = vld [vmem:[%s6340_s1 + $0x40] ss:$16 sps:$4 sm:$0xff]   ;;  %v4329_v12 = vld [vmem:[%s6340_s1 + $0x2c] ss:$16 sps:$4 sm:$0xff]   ;;  %296 = vmatpush1.bf16.msra.mxu1 %v4328_v10 }
   0x4   :  { %256 = vmatprep.subr.bf16.mxu0 %v4306_v3  ;;  %v4312_v7 = vld [vmem:[%s6340_s1 + $0x64] ss:$16 sps:$4 sm:$0xff]   ;;  %v4314_v8 = vld [vmem:[%s6340_s1 + $0x60] ss:$16 sps:$4 sm:$0xff]   ;;  %v4331_v13 = vld [vmem:[%s6340_s1 + $0x28] ss:$16 sps:$4 sm:$0xff]   ;;  %297 = vmatprep.subr.bf16.mxu1 %v4329_v12 }
   0x5   :  { %v4315_v11 = vld [vmem:[%s6340_s1 + $0x84] ss:$16 sps:$4 sm:$0xff]   ;;  %v4332_v14 = vld [vmem:[%s6340_s1 + $0x4c] ss:$16 sps:$4 sm:$0xff]   ;;  %v4317_v15 = vld [vmem:[%s6340_s1 + $0x80] ss:$16 sps:$4 sm:$0xff]  }
   0x6   :  { %v4318_v16 = vld [vmem:[%s6340_s1 + $0xa4] ss:$16 sps:$4 sm:$0xff]   ;;  %v4334_v17 = vld [vmem:[%s6340_s1 + $0x48] ss:$16 sps:$4 sm:$0xff]   ;;  %v4335_v18 = vld [vmem:[%s6340_s1 + $0x6c] ss:$16 sps:$4 sm:$0xff]  }
   0x7   :  { %257 = vmatpush1.bf16.msra.mxu0 %v4308_v4  ;;  %298 = vmatpush1.bf16.msra.mxu1 %v4331_v13  ;;  %v4320_v19 = vld [vmem:[%s6340_s1 + $0xa0] ss:$16 sps:$4 sm:$0xff]   ;;  %v4321_v20 = vld [vmem:[%s6340_s1 + $0xc4] ss:$16 sps:$4 sm:$0xff]   ;;  %v4337_v22 = vld [vmem:[%s6340_s1 + $0x68] ss:$16 sps:$4 sm:$0xff]  }
   0x8   :  { %258 = vmatprep.subr.bf16.mxu0 %v4309_v5  ;;  %299 = vmatprep.subr.bf16.mxu1 %v4332_v14  ;;  %v63_v21 = vld [vmem:[%s6340_s1 + $0xe0] sm:$0x33]  ;;  %v4338_v23 = vld [vmem:[%s6340_s1 + $0x8c] ss:$16 sps:$4 sm:$0xff]   ;;  %v4340_v27 = vld [vmem:[%s6340_s1 + $0x88] ss:$16 sps:$4 sm:$0xff]  }
   0x9   :  { %v4323_v24 = vld [vmem:[%s6340_s1 + $0xc0] ss:$16 sps:$4 sm:$0xff]   ;;  %v3725_v25 = vcombine.high %v63_v21, %v63_v21  ;;  %v3724_v26 = vcombine.low %v63_v21, %v63_v21  ;;  %v4341_v28 = vld [vmem:[%s6340_s1 + $0xac] ss:$16 sps:$4 sm:$0xff]   ;;  %v4343_v32 = vld [vmem:[%s6340_s1 + $0xa8] ss:$16 sps:$4 sm:$0xff]  }
   0xa   :  { %v4351_v30 = vld [vmem:[%s6342_s3 + $0x4] ss:$28 sps:$4 sm:$0xff]   ;;  %v4344_v33 = vld [vmem:[%s6340_s1 + $0xcc] ss:$16 sps:$4 sm:$0xff]   ;;  %v4346_v37 = vld [vmem:[%s6340_s1 + $0xc8] ss:$16 sps:$4 sm:$0xff]  }
   0xb   :  { %259 = vmatpush1.bf16.msra.mxu0 %v4311_v6  ;;  %300 = vmatpush1.bf16.msra.mxu1 %v4334_v17  ;;  %v243_v29 = vsel %vm241_vm0, %v3724_v26, 0  ;;  %v34_v31 = vld [vmem:[%s6339_s0] sm:$0xf]  ;;  %v64_v34 = vld [vmem:[%s6340_s1 + $0xe8] sm:$0x33] }
   0xc   :  { %260 = vmatprep.subr.bf16.mxu0 %v4312_v7  ;;  %301 = vmatprep.subr.bf16.mxu1 %v4335_v18  ;;  %v4349_v35 = vld [vmem:[%s6342_s3] ss:$28 sps:$4 sm:$0xff]   ;;  %v3727_v38 = vcombine.high %v64_v34, %v64_v34  ;;  %v3726_v39 = vcombine.low %v64_v34, %v64_v34  ;;  %v4355_v40 = vld [vmem:[%s6342_s3 + $0x38] ss:$28 sps:$4 sm:$0xff]   ;;  %v4354_v43 = vld [vmem:[%s6342_s3 + $0xc] ss:$28 sps:$4 sm:$0xff]  }
   0xd   :  { %v4357_v36 = vld [vmem:[%s6342_s3 + $0x3c] ss:$28 sps:$4 sm:$0xff]   ;;  %v4363_v41 = vld [vmem:[%s6342_s3 + $0x74] ss:$28 sps:$4 sm:$0xff]   ;;  %v4369_v45 = vld [vmem:[%s6342_s3 + $0xac] ss:$28 sps:$4 sm:$0xff]  }
   0xe   :  { %v249_v42 = vsel %vm241_vm0, %v3726_v39, 0  ;;  %v4361_v44 = vld [vmem:[%s6342_s3 + $0x70] ss:$28 sps:$4 sm:$0xff]   ;;  %v4352_v46 = vld [vmem:[%s6342_s3 + $0x8] ss:$28 sps:$4 sm:$0xff]  }
   0xf   :  { %261 = vmatpush1.bf16.msra.mxu0 %v4314_v8  ;;  %302 = vmatpush1.bf16.msra.mxu1 %v4337_v22  ;;  %v4360_v47 = vld [vmem:[%s6342_s3 + $0x44] ss:$28 sps:$4 sm:$0xff]   ;;  %v4366_v51 = vld [vmem:[%s6342_s3 + $0x7c] ss:$28 sps:$4 sm:$0xff]   ;;  %v4372_v55 = vld [vmem:[%s6342_s3 + $0xb4] ss:$28 sps:$4 sm:$0xff]  }
  0x10   :  { %262 = vmatprep.subr.bf16.mxu0 %v4315_v11  ;;  %303 = vmatprep.subr.bf16.mxu1 %v4338_v23  ;;  %v4367_v48 = vld [vmem:[%s6342_s3 + $0xa8] ss:$28 sps:$4 sm:$0xff]   ;;  %v4358_v50 = vld [vmem:[%s6342_s3 + $0x40] ss:$28 sps:$4 sm:$0xff]   ;;  %v4364_v54 = vld [vmem:[%s6342_s3 + $0x78] ss:$28 sps:$4 sm:$0xff]  }
  0x11   :  { %v4375_v49 = vld [vmem:[%s6342_s3 + $0xe4] ss:$28 sps:$4 sm:$0xff]   ;;  %v4381_v53 = vld [vmem:[%s6342_s3 + $0x11c] ss:$28 sps:$4 sm:$0xff]   ;;  %v4387_v57 = vld [vmem:[%s6342_s3 + $0x154] ss:$28 sps:$4 sm:$0xff]  }
  0x12   :  { %v4373_v52 = vld [vmem:[%s6342_s3 + $0xe0] ss:$28 sps:$4 sm:$0xff]   ;;  %v4379_v56 = vld [vmem:[%s6342_s3 + $0x118] ss:$28 sps:$4 sm:$0xff]   ;;  %v4370_v58 = vld [vmem:[%s6342_s3 + $0xb0] ss:$28 sps:$4 sm:$0xff]  }
  0x13   :  { %263 = vmatpush1.bf16.msra.mxu0 %v4317_v15  ;;  %304 = vmatpush1.bf16.msra.mxu1 %v4340_v27  ;;  %v4378_v59 = vld [vmem:[%s6342_s3 + $0xec] ss:$28 sps:$4 sm:$0xff]   ;;  %v4384_v62 = vld [vmem:[%s6342_s3 + $0x124] ss:$28 sps:$4 sm:$0xff]   ;;  %v4390_v4 = vld [vmem:[%s6342_s3 + $0x15c] ss:$28 sps:$4 sm:$0xff]  }
  0x14   :  { %264 = vmatprep.subr.bf16.mxu0 %v4318_v16  ;;  %305 = vmatprep.subr.bf16.mxu1 %v4341_v28  ;;  %v4376_v60 = vld [vmem:[%s6342_s3 + $0xe8] ss:$28 sps:$4 sm:$0xff]   ;;  %v4385_v61 = vld [vmem:[%s6342_s3 + $0x150] ss:$28 sps:$4 sm:$0xff]   ;;  %v4382_v3 = vld [vmem:[%s6342_s3 + $0x120] ss:$28 sps:$4 sm:$0xff]  }
  0x15   :  { %v4393_v63 = vld [vmem:[%s6342_s3 + $0x18c] ss:$28 sps:$4 sm:$0xff]   ;;  %v4399_v1 = vld [vmem:[%s6342_s3 + $0x1c4] ss:$28 sps:$4 sm:$0xff]   ;;  %v4405_v6 = vld [vmem:[%s6342_s3 + $0x1fc] ss:$28 sps:$4 sm:$0xff]  }
  0x16   :  { %v4391_v0 = vld [vmem:[%s6342_s3 + $0x188] ss:$28 sps:$4 sm:$0xff]   ;;  %v4397_v5 = vld [vmem:[%s6342_s3 + $0x1c0] ss:$28 sps:$4 sm:$0xff]   ;;  %v4388_v7 = vld [vmem:[%s6342_s3 + $0x158] ss:$28 sps:$4 sm:$0xff]  }
  0x17   :  { %265 = vmatpush1.bf16.msra.mxu0 %v4320_v19  ;;  %306 = vmatpush1.bf16.msra.mxu1 %v4343_v32  ;;  %v4396_v8 = vld [vmem:[%s6342_s3 + $0x194] ss:$28 sps:$4 sm:$0xff]   ;;  %v4402_v12 = vld [vmem:[%s6342_s3 + $0x1cc] ss:$28 sps:$4 sm:$0xff]   ;;  %v4408_v16 = vld [vmem:[%s6342_s3 + $0x204] ss:$28 sps:$4 sm:$0xff]  }
  0x18   :  { %266 = vmatprep.subr.bf16.mxu0 %v4321_v20  ;;  %307 = vmatprep.subr.bf16.mxu1 %v4344_v33  ;;  %v4403_v9 = vld [vmem:[%s6342_s3 + $0x1f8] ss:$28 sps:$4 sm:$0xff]   ;;  %v4394_v11 = vld [vmem:[%s6342_s3 + $0x190] ss:$28 sps:$4 sm:$0xff]   ;;  %v4400_v15 = vld [vmem:[%s6342_s3 + $0x1c8] ss:$28 sps:$4 sm:$0xff]  }
  0x19   :  { %v4411_v10 = vld [vmem:[%s6342_s3 + $0x234] ss:$28 sps:$4 sm:$0xff]   ;;  %v4417_v14 = vld [vmem:[%s6342_s3 + $0x26c] ss:$28 sps:$4 sm:$0xff]   ;;  %v4423_v18 = vld [vmem:[%s6342_s3 + $0x2a4] ss:$28 sps:$4 sm:$0xff]  }
  0x1a   :  { %v4409_v13 = vld [vmem:[%s6342_s3 + $0x230] ss:$28 sps:$4 sm:$0xff]   ;;  %v4415_v17 = vld [vmem:[%s6342_s3 + $0x268] ss:$28 sps:$4 sm:$0xff]   ;;  %v4406_v19 = vld [vmem:[%s6342_s3 + $0x200] ss:$28 sps:$4 sm:$0xff]  }
  0x1b   :  { %267 = vmatpush1.bf16.msra.mxu0 %v4323_v24  ;;  %308 = vmatpush1.bf16.msra.mxu1 %v4346_v37  ;;  %v4414_v20 = vld [vmem:[%s6342_s3 + $0x23c] ss:$28 sps:$4 sm:$0xff]   ;;  %v4420_v24 = vld [vmem:[%s6342_s3 + $0x274] ss:$28 sps:$4 sm:$0xff]   ;;  %v4426_v27 = vld [vmem:[%s6342_s3 + $0x2ac] ss:$28 sps:$4 sm:$0xff]  }
  0x1c   :  { %3728 = vmatprep.subr.msk.bf16.mxu0 %vm241_vm0, %v3725_v25  ;;  %3730 = vmatprep.subr.msk.bf16.mxu1 %vm241_vm0, %v3727_v38  ;;  %v4421_v21 = vld [vmem:[%s6342_s3 + $0x2a0] ss:$28 sps:$4 sm:$0xff]   ;;  %v4412_v23 = vld [vmem:[%s6342_s3 + $0x238] ss:$28 sps:$4 sm:$0xff]   ;;  %v4418_v26 = vld [vmem:[%s6342_s3 + $0x270] ss:$28 sps:$4 sm:$0xff]  }
  0x1d   :  { %v4429_v22 = vld [vmem:[%s6342_s3 + $0x2dc] ss:$28 sps:$4 sm:$0xff]   ;;  %v4424_v28 = vld [vmem:[%s6342_s3 + $0x2a8] ss:$28 sps:$4 sm:$0xff]   ;;  %v4433_v33 = vld [vmem:[%s6342_s3 + $0x310] ss:$28 sps:$4 sm:$0xff]  }
  0x1e   :  { %v4427_v25 = vld [vmem:[%s6342_s3 + $0x2d8] ss:$28 sps:$4 sm:$0xff]   ;;  %v4439_v37 = vld [vmem:[%s6342_s3 + $0x348] ss:$28 sps:$4 sm:$0xff]   ;;  %v4442_v38 = vld [vmem:[%s6342_s3 + $0x350] ss:$28 sps:$4 sm:$0xff]  }
  0x1f   :  { %269 = vmatpush1.bf16.msra.mxu0 %v243_v29  ;;  %310 = vmatpush1.bf16.msra.mxu1 %v249_v42  ;;  %v4432_v29 = vld [vmem:[%s6342_s3 + $0x2e4] ss:$28 sps:$4 sm:$0xff]   ;;  %v4438_v32 = vld [vmem:[%s6342_s3 + $0x31c] ss:$28 sps:$4 sm:$0xff]  }
  0x20   :  { %1665 = vmatprep.subr.bf16.mxu0 %v4351_v30  ;;  %1747 = vmatprep.subr.bf16.mxu1 %v4354_v43  ;;  %v4430_v30 = vld [vmem:[%s6342_s3 + $0x2e0] ss:$28 sps:$4 sm:$0xff]   ;;  %v4436_v34 = vld [vmem:[%s6342_s3 + $0x318] ss:$28 sps:$4 sm:$0xff]  }
  0x21   :  { %v4447_v39 = vld [vmem:[%s6342_s3 + $0x384] ss:$28 sps:$4 sm:$0xff]  }
  0x22   :  { %3729 = vmatmul.mubr.msk.bf16.vlgmr.msra.gmra.mrb[0].mxu0 %vm237_vm1, %v34_v31  ;;  %3731 = vmatmul.mubr.msk.bf16.vlgmr.msra.gmra.mrb[0].mxu1 %vm237_vm1, %v34_v31  ;;  %v4435_v31 = vld [vmem:[%s6342_s3 + $0x314] ss:$28 sps:$4 sm:$0xff]  }
  0x23   :  { %1666 = vmatpush1.bf16.msra.mxu0 %v4349_v35  ;;  %1748 = vmatpush1.bf16.msra.mxu1 %v4352_v46  ;;  %v4441_v35 = vld [vmem:[%s6342_s3 + $0x34c] ss:$28 sps:$4 sm:$0xff]  }
  0x24   :  { %1667 = vmatprep.subr.bf16.mxu0 %v4357_v36  ;;  %1749 = vmatprep.subr.bf16.mxu1 %v4360_v47  ;;  %v4444_v36 = vld [vmem:[%s6342_s3 + $0x354] ss:$28 sps:$4 sm:$0xff]  }
  0x27   :  { %1668 = vmatpush1.bf16.msra.mxu0 %v4355_v40  ;;  %1750 = vmatpush1.bf16.msra.mxu1 %v4358_v50  ;;  %v4450_v40 = vld [vmem:[%s6342_s3 + $0x38c] ss:$28 sps:$4 sm:$0xff]  }
  0x28   :  { %1669 = vmatprep.subr.bf16.mxu0 %v4363_v41  ;;  %1751 = vmatprep.subr.bf16.mxu1 %v4366_v51  ;;  %v67_v41 = vlaneseq }
  0x2a   :  { %v5250_v42 = vshrl.u32 %v67_v41, 7 }
  0x2b   :  { %1670 = vmatpush1.bf16.msra.mxu0 %v4361_v44  ;;  %1752 = vmatpush1.bf16.msra.mxu1 %v4364_v54 }
  0x2c   :  { %1671 = vmatprep.subr.bf16.mxu0 %v4369_v45  ;;  %1753 = vmatprep.subr.bf16.mxu1 %v4372_v55  ;;  %v5253_v43 = vsub.s32 0, %v5250_v42 }
  0x2f   :  { %1672 = vmatpush1.bf16.msra.mxu0 %v4367_v48  ;;  %1754 = vmatpush1.bf16.msra.mxu1 %v4370_v58 }
  0x30   :  { %1673 = vmatprep.subr.bf16.mxu0 %v4375_v49  ;;  %1755 = vmatprep.subr.bf16.mxu1 %v4378_v59 }
  0x33   :  { %1674 = vmatpush1.bf16.msra.mxu0 %v4373_v52  ;;  %1756 = vmatpush1.bf16.msra.mxu1 %v4376_v60 }
  0x34   :  { %1675 = vmatprep.subr.bf16.mxu0 %v4381_v53  ;;  %1757 = vmatprep.subr.bf16.mxu1 %v4384_v62 }
  0x37   :  { %1676 = vmatpush1.bf16.msra.mxu0 %v4379_v56  ;;  %1758 = vmatpush1.bf16.msra.mxu1 %v4382_v3 }
  0x38   :  { %1677 = vmatprep.subr.bf16.mxu0 %v4387_v57  ;;  %1759 = vmatprep.subr.bf16.mxu1 %v4390_v4 }
  0x3b   :  { %1678 = vmatpush1.bf16.msra.mxu0 %v4385_v61  ;;  %1760 = vmatpush1.bf16.msra.mxu1 %v4388_v7 }
  0x3c   :  { %1679 = vmatprep.subr.bf16.mxu0 %v4393_v63  ;;  %1761 = vmatprep.subr.bf16.mxu1 %v4396_v8 }
  0x3f   :  { %1680 = vmatpush1.bf16.msra.mxu0 %v4391_v0  ;;  %1762 = vmatpush1.bf16.msra.mxu1 %v4394_v11 }
  0x40   :  { %1681 = vmatprep.subr.bf16.mxu0 %v4399_v1  ;;  %1763 = vmatprep.subr.bf16.mxu1 %v4402_v12 }
  0x43   :  { %1682 = vmatpush1.bf16.msra.mxu0 %v4397_v5  ;;  %1764 = vmatpush1.bf16.msra.mxu1 %v4400_v15 }
  0x44   :  { %1683 = vmatprep.subr.bf16.mxu0 %v4405_v6  ;;  %1765 = vmatprep.subr.bf16.mxu1 %v4408_v16 }
  0x47   :  { %1684 = vmatpush1.bf16.msra.mxu0 %v4403_v9  ;;  %1766 = vmatpush1.bf16.msra.mxu1 %v4406_v19 }
  0x48   :  { %1685 = vmatprep.subr.bf16.mxu0 %v4411_v10  ;;  %1767 = vmatprep.subr.bf16.mxu1 %v4414_v20 }
  0x4b   :  { %1686 = vmatpush1.bf16.msra.mxu0 %v4409_v13  ;;  %1768 = vmatpush1.bf16.msra.mxu1 %v4412_v23 }
  0x4c   :  { %1687 = vmatprep.subr.bf16.mxu0 %v4417_v14  ;;  %1769 = vmatprep.subr.bf16.mxu1 %v4420_v24 }
  0x4f   :  { %1688 = vmatpush1.bf16.msra.mxu0 %v4415_v17  ;;  %1770 = vmatpush1.bf16.msra.mxu1 %v4418_v26 }
  0x50   :  { %1689 = vmatprep.subr.bf16.mxu0 %v4423_v18  ;;  %1771 = vmatprep.subr.bf16.mxu1 %v4426_v27 }
  0x53   :  { %1690 = vmatpush1.bf16.msra.mxu0 %v4421_v21  ;;  %1772 = vmatpush1.bf16.msra.mxu1 %v4424_v28 }
  0x54   :  { %1691 = vmatprep.subr.bf16.mxu0 %v4429_v22  ;;  %1773 = vmatprep.subr.bf16.mxu1 %v4432_v29 }
  0x57   :  { %1692 = vmatpush1.bf16.msra.mxu0 %v4427_v25  ;;  %1774 = vmatpush1.bf16.msra.mxu1 %v4430_v30 }
  0x58   :  { %1693 = vmatprep.subr.bf16.mxu0 %v4435_v31  ;;  %1775 = vmatprep.subr.bf16.mxu1 %v4438_v32 }
  0x5b   :  { %1694 = vmatpush1.bf16.msra.mxu0 %v4433_v33  ;;  %1776 = vmatpush1.bf16.msra.mxu1 %v4436_v34 }
  0x5c   :  { %1695 = vmatprep.subr.bf16.mxu0 %v4441_v35  ;;  %1777 = vmatprep.subr.bf16.mxu1 %v4444_v36 }
  0x5f   :  { %1696 = vmatpush1.bf16.msra.mxu0 %v4439_v37  ;;  %1778 = vmatpush1.bf16.msra.mxu1 %v4442_v38 }
  0x60   :  { %1706 = vmatprep.subr.bf16.mxu0 %v4447_v39  ;;  %1788 = vmatprep.subr.bf16.mxu1 %v4450_v40 }
  0x61   :  { %14 = vsyncpa [#allocation3], 0  ;;  %v5258_v44 = vld [vmem:[%s6341_s2] sm:$0xf]  ;;  %v5261_v45 = vsub.s32 1, %v5250_v42  ;;  %v81_v56 = vsub.s32 3, %v5250_v42 }
  0x62   :  { %v70_v46 = vrot.slane %v5258_v44, %v5253_v43  ;;  %v4445_v60 = vld [vmem:[%s6342_s3 + $0x380] ss:$28 sps:$4 sm:$0xff]   ;;  %v4448_v61 = vld [vmem:[%s6342_s3 + $0x388] ss:$28 sps:$4 sm:$0xff]   ;;  %v4451_v5 = vld [vmem:[%s6342_s3 + $0x3b8] ss:$28 sps:$4 sm:$0xff]  }
  0x63   :  { %v74_v47 = vrot.slane %v5258_v44, %v5261_v45  ;;  %v82_v62 = vrot.slane %v5258_v44, %v81_v56  ;;  %v4453_v0 = vld [vmem:[%s6342_s3 + $0x3bc] ss:$28 sps:$4 sm:$0xff]   ;;  %v4456_v1 = vld [vmem:[%s6342_s3 + $0x3c4] ss:$28 sps:$4 sm:$0xff]   ;;  %v4459_v9 = vld [vmem:[%s6342_s3 + $0x3f4] ss:$28 sps:$4 sm:$0xff]  }
  0x64   :  { %v4454_v6 = vld [vmem:[%s6342_s3 + $0x3c0] ss:$28 sps:$4 sm:$0xff]   ;;  %v4457_v13 = vld [vmem:[%s6342_s3 + $0x3f0] ss:$28 sps:$4 sm:$0xff]   ;;  %v4460_v14 = vld [vmem:[%s6342_s3 + $0x3f8] ss:$28 sps:$4 sm:$0xff]  }
  0x65   :  { %v4462_v10 = vld [vmem:[%s6342_s3 + $0x3fc] ss:$28 sps:$4 sm:$0xff]   ;;  %v4465_v16 = vld [vmem:[%s6342_s3 + $0x42c] ss:$28 sps:$4 sm:$0xff]   ;;  %v4468_v17 = vld [vmem:[%s6342_s3 + $0x434] ss:$28 sps:$4 sm:$0xff]  }
  0x66   :  { %vm1661_vm2 = vcmask 654336   ;;  %v4463_v19 = vld [vmem:[%s6342_s3 + $0x428] ss:$28 sps:$4 sm:$0xff]   ;;  %v4466_v20 = vld [vmem:[%s6342_s3 + $0x430] ss:$28 sps:$4 sm:$0xff]   ;;  %vm4899_vm3 = vmmov 0  }
  0x67   :  { %v4471_v21 = vld [vmem:[%s6342_s3 + $0x464] ss:$28 sps:$4 sm:$0xff]   ;;  %v4474_v22 = vld [vmem:[%s6342_s3 + $0x46c] ss:$28 sps:$4 sm:$0xff]   ;;  %v4477_v25 = vld [vmem:[%s6342_s3 + $0x49c] ss:$28 sps:$4 sm:$0xff]  }
  0x68   :  { %v4469_v23 = vld [vmem:[%s6342_s3 + $0x460] ss:$28 sps:$4 sm:$0xff]   ;;  %v4472_v24 = vld [vmem:[%s6342_s3 + $0x468] ss:$28 sps:$4 sm:$0xff]   ;;  %v4475_v27 = vld [vmem:[%s6342_s3 + $0x498] ss:$28 sps:$4 sm:$0xff]  }
  0x69   :  { %v4480_v26 = vld [vmem:[%s6342_s3 + $0x4a4] ss:$28 sps:$4 sm:$0xff]   ;;  %v4483_v29 = vld [vmem:[%s6342_s3 + $0x4d4] ss:$28 sps:$4 sm:$0xff]   ;;  %v4486_v30 = vld [vmem:[%s6342_s3 + $0x4dc] ss:$28 sps:$4 sm:$0xff]  }
  0x6a   :  { %v4478_v28 = vld [vmem:[%s6342_s3 + $0x4a0] ss:$28 sps:$4 sm:$0xff]   ;;  %v4481_v31 = vld [vmem:[%s6342_s3 + $0x4d0] ss:$28 sps:$4 sm:$0xff]   ;;  %v4484_v32 = vld [vmem:[%s6342_s3 + $0x4d8] ss:$28 sps:$4 sm:$0xff]  }
  0x6b   :  { %v4489_v33 = vld [vmem:[%s6342_s3 + $0x50c] ss:$28 sps:$4 sm:$0xff]   ;;  %v4492_v34 = vld [vmem:[%s6342_s3 + $0x514] ss:$28 sps:$4 sm:$0xff]   ;;  %v4495_v37 = vld [vmem:[%s6342_s3 + $0x544] ss:$28 sps:$4 sm:$0xff]  }
  0x6c   :  { %v4487_v35 = vld [vmem:[%s6342_s3 + $0x508] ss:$28 sps:$4 sm:$0xff]   ;;  %v4490_v36 = vld [vmem:[%s6342_s3 + $0x510] ss:$28 sps:$4 sm:$0xff]   ;;  %v4493_v39 = vld [vmem:[%s6342_s3 + $0x540] ss:$28 sps:$4 sm:$0xff]  }
  0x6d   :  { %v4498_v38 = vld [vmem:[%s6342_s3 + $0x54c] ss:$28 sps:$4 sm:$0xff]   ;;  %v4501_v41 = vld [vmem:[%s6342_s3 + $0x57c] ss:$28 sps:$4 sm:$0xff]   ;;  %vm3109_vm4 = vcmask 785408   ;;  %vm3597_vm5 = vcmask 261120  }
  0x6e   :  { %v4496_v40 = vld [vmem:[%s6342_s3 + $0x548] ss:$28 sps:$4 sm:$0xff]  }
  0xf5   :  { %v288_v48 = vpop.f32.mrb[0].mxu0  ;;  %v5289_v3 = vpop.f32.mrb[0].mxu1 }
  0xf6   :  { %v289_v49 = vadd.f32 %v288_v48, %v70_v46  ;;  %v290_v50 = vpop.f32.mrb[1].mxu0  ;;  %v331_v4 = vpop.f32.mrb[1].mxu1  ;;  %v4504_v46 = vld [vmem:[%s6342_s3 + $0x584] ss:$28 sps:$4 sm:$0xff]   ;;  %v4499_v48 = vld [vmem:[%s6342_s3 + $0x578] ss:$28 sps:$4 sm:$0xff]  }
  0xf7   :  { %v291_v51 = vadd.f32 %v290_v50, %v74_v47  ;;  %v292_v52 = vpop.f32.mrb[2].mxu0  ;;  %v332_v7 = vadd.f32 %v331_v4, %v82_v62  ;;  %v333_v8 = vpop.f32.mrb[2].mxu1  ;;  %v5396_v47 = vsub.s32 2, %v5250_v42  ;;  %v4519_v62 = vld [vmem:[%s6342_s3 + $0x624] ss:$28 sps:$4 sm:$0xff]  }
  0xf8   :  { %v336_v53 = vmul.f32 0.01, %v289_v49  ;;  %v293_v54 = vpop.f32.mrb[3].mxu0  ;;  %v334_v11 = vpop.f32.mrb[3].mxu1  ;;  %v4510_v52 = vld [vmem:[%s6342_s3 + $0x5bc] ss:$28 sps:$4 sm:$0xff]  }
  0xf9   :  { %v337_v55 = vmul.f32 0.01, %v291_v51  ;;  %v339_v12 = vmul.f32 0.01, %v332_v7  ;;  %v78_v50 = vrot.slane %v5258_v44, %v5396_v47  ;;  %v4508_v54 = vld [vmem:[%s6342_s3 + $0x5b8] ss:$28 sps:$4 sm:$0xff]  }
  0xfa   :  { %v340_v57 = vmax.f32 %v289_v49, %v336_v53  ;;  %v4502_v49 = vld [vmem:[%s6342_s3 + $0x580] ss:$28 sps:$4 sm:$0xff]   ;;  %v4505_v53 = vld [vmem:[%s6342_s3 + $0x5b0] ss:$28 sps:$4 sm:$0xff]  }
  0xfb   :  { %v341_v58 = vmax.f32 %v291_v51, %v337_v55  ;;  %v343_v15 = vmax.f32 %v332_v7, %v339_v12  ;;  %v4507_v51 = vld [vmem:[%s6342_s3 + $0x5b4] ss:$28 sps:$4 sm:$0xff]   ;;  %v330_v44 = vadd.f32 %v5289_v3, %v78_v50  ;;  %v4513_v55 = vld [vmem:[%s6342_s3 + $0x5ec] ss:$28 sps:$4 sm:$0xff]   ;;  %v4571_v50 = vld [vmem:[%s6342_s3 + $0x240] ss:$28 sps:$4 sm:$0xff]  }
  0xfc   :  { %v5279_v63 = vpack.c.bf16 %v340_v57, %v340_v57  ;;  %v4516_v57 = vld [vmem:[%s6342_s3 + $0x5f4] ss:$28 sps:$4 sm:$0xff]   ;;  %v4520_v3 = vld [vmem:[%s6342_s3 + $0x628] ss:$28 sps:$4 sm:$0xff]  }
  0xfd   :  { %v5268_v59 = vpack.c.bf16 %v341_v58, %v341_v58  ;;  %v5317_v18 = vpack.c.bf16 %v343_v15, %v343_v15  ;;  %v4511_v58 = vld [vmem:[%s6342_s3 + $0x5e8] ss:$28 sps:$4 sm:$0xff]   ;;  %v4523_v7 = vld [vmem:[%s6342_s3 + $0x10] ss:$28 sps:$4 sm:$0xff]  }
  0xfe   :  { %v4531_v11 = vld [vmem:[%s6342_s3 + $0x210] ss:$28 sps:$4 sm:$0xff]   ;;  %v4528_v12 = vld [vmem:[%s6342_s3 + $0x48] ss:$28 sps:$4 sm:$0xff]  }
  0xff   :  { %1697 = vmatprep.mubr.bf16.mxu0 %v5268_v59  ;;  %1779 = vmatprep.mubr.bf16.mxu1 %v5268_v59  ;;  %v4536_v15 = vld [vmem:[%s6342_s3 + $0x248] ss:$28 sps:$4 sm:$0xff]  }
 0x100   :  { %1698 = vmatmul.mubr.bf16.vlgmr.msra.gmra.mrb[4].mxu0 %v5279_v63  ;;  %1780 = vmatmul.mubr.bf16.vlgmr.msra.gmra.mrb[4].mxu1 %v5279_v63 }
 0x101   :  { %1707 = vmatpush1.bf16.msra.mxu0 %v4445_v60  ;;  %1789 = vmatpush1.bf16.msra.mxu1 %v4448_v61  ;;  %v4514_v60 = vld [vmem:[%s6342_s3 + $0x5f0] ss:$28 sps:$4 sm:$0xff]   ;;  %v338_v61 = vmul.f32 0.01, %v330_v44 }
 0x102   :  { %1708 = vmatprep.subr.bf16.mxu0 %v4453_v0  ;;  %1790 = vmatprep.subr.bf16.mxu1 %v4456_v1  ;;  %v4522_v0 = vld [vmem:[%s6342_s3 + $0x62c] ss:$28 sps:$4 sm:$0xff]   ;;  %v4517_v1 = vld [vmem:[%s6342_s3 + $0x620] ss:$28 sps:$4 sm:$0xff]  }
 0x103   :  { %3935 = vmatprep.mubr.msk.bf16.mxu0 %vm1661_vm2, %v5317_v18  ;;  %3936 = vmatprep.mubr.msk.bf16.mxu1 %vm1661_vm2, %v5317_v18  ;;  %v342_v4 = vmax.f32 %v330_v44, %v338_v61  ;;  %v4581_v44 = vld [vmem:[%s6342_s3 + $0x2b4] ss:$28 sps:$4 sm:$0xff]  }
 0x104   :  { %v4586_v61 = vld [vmem:[%s6342_s3 + $0x4b0] ss:$28 sps:$4 sm:$0xff]  }
 0x105   :  { %1709 = vmatpush1.bf16.msra.mxu0 %v4451_v5  ;;  %1791 = vmatpush1.bf16.msra.mxu1 %v4454_v6  ;;  %v4525_v5 = vld [vmem:[%s6342_s3 + $0x14] ss:$28 sps:$4 sm:$0xff]   ;;  %v5452_v8 = vpack.c.bf16 %v342_v4, %v342_v4 }
 0x106   :  { %1710 = vmatprep.subr.bf16.mxu0 %v4459_v9  ;;  %1792 = vmatprep.subr.bf16.mxu1 %v4462_v10  ;;  %v4526_v6 = vld [vmem:[%s6342_s3 + $0x1d8] ss:$28 sps:$4 sm:$0xff]   ;;  %v4530_v10 = vld [vmem:[%s6342_s3 + $0x4c] ss:$28 sps:$4 sm:$0xff]  }
 0x107   :  { %v4527_v9 = vld [vmem:[%s6342_s3 + $0x18] ss:$28 sps:$4 sm:$0xff]  }
 0x108   :  { %v4591_v4 = vld [vmem:[%s6342_s3 + $0x358] ss:$28 sps:$4 sm:$0xff]  }
 0x109   :  { %1711 = vmatpush1.bf16.msra.mxu0 %v4457_v13  ;;  %1793 = vmatpush1.bf16.msra.mxu1 %v4460_v14  ;;  %v4532_v13 = vld [vmem:[%s6342_s3 + $0x50] ss:$28 sps:$4 sm:$0xff]   ;;  %v4535_v14 = vld [vmem:[%s6342_s3 + $0x84] ss:$28 sps:$4 sm:$0xff]  }
 0x10a   :  { %1712 = vmatprep.subr.bf16.mxu0 %v4465_v16  ;;  %1794 = vmatprep.subr.bf16.mxu1 %v4468_v17  ;;  %v4533_v16 = vld [vmem:[%s6342_s3 + $0x80] ss:$28 sps:$4 sm:$0xff]  }
 0x10b   :  { %v4540_v17 = vld [vmem:[%s6342_s3 + $0xbc] ss:$28 sps:$4 sm:$0xff]  }
 0x10d   :  { %1713 = vmatpush1.bf16.msra.mxu0 %v4463_v19  ;;  %1795 = vmatpush1.bf16.msra.mxu1 %v4466_v20  ;;  %v4541_v19 = vld [vmem:[%s6342_s3 + $0x280] ss:$28 sps:$4 sm:$0xff]   ;;  %v4538_v20 = vld [vmem:[%s6342_s3 + $0xb8] ss:$28 sps:$4 sm:$0xff]  }
 0x10e   :  { %1714 = vmatprep.subr.bf16.mxu0 %v4471_v21  ;;  %1796 = vmatprep.subr.bf16.mxu1 %v4474_v22  ;;  %v4542_v21 = vld [vmem:[%s6342_s3 + $0xc0] ss:$28 sps:$4 sm:$0xff]   ;;  %v4545_v22 = vld [vmem:[%s6342_s3 + $0xf4] ss:$28 sps:$4 sm:$0xff]  }
 0x111   :  { %1715 = vmatpush1.bf16.msra.mxu0 %v4469_v23  ;;  %1797 = vmatpush1.bf16.msra.mxu1 %v4472_v24  ;;  %v4546_v23 = vld [vmem:[%s6342_s3 + $0x2b8] ss:$28 sps:$4 sm:$0xff]   ;;  %v4543_v24 = vld [vmem:[%s6342_s3 + $0xf0] ss:$28 sps:$4 sm:$0xff]  }
 0x112   :  { %1716 = vmatprep.subr.bf16.mxu0 %v4477_v25  ;;  %1798 = vmatprep.subr.bf16.mxu1 %v4480_v26  ;;  %v4547_v25 = vld [vmem:[%s6342_s3 + $0xf8] ss:$28 sps:$4 sm:$0xff]   ;;  %v4550_v26 = vld [vmem:[%s6342_s3 + $0x12c] ss:$28 sps:$4 sm:$0xff]  }
 0x115   :  { %1717 = vmatpush1.bf16.msra.mxu0 %v4475_v27  ;;  %1799 = vmatpush1.bf16.msra.mxu1 %v4478_v28  ;;  %v4551_v27 = vld [vmem:[%s6342_s3 + $0x2f0] ss:$28 sps:$4 sm:$0xff]   ;;  %v4548_v28 = vld [vmem:[%s6342_s3 + $0x128] ss:$28 sps:$4 sm:$0xff]  }
 0x116   :  { %1718 = vmatprep.subr.bf16.mxu0 %v4483_v29  ;;  %1800 = vmatprep.subr.bf16.mxu1 %v4486_v30  ;;  %v4552_v29 = vld [vmem:[%s6342_s3 + $0x130] ss:$28 sps:$4 sm:$0xff]   ;;  %v4555_v30 = vld [vmem:[%s6342_s3 + $0x164] ss:$28 sps:$4 sm:$0xff]  }
 0x119   :  { %1719 = vmatpush1.bf16.msra.mxu0 %v4481_v31  ;;  %1801 = vmatpush1.bf16.msra.mxu1 %v4484_v32  ;;  %v4556_v31 = vld [vmem:[%s6342_s3 + $0x328] ss:$28 sps:$4 sm:$0xff]   ;;  %v4553_v32 = vld [vmem:[%s6342_s3 + $0x160] ss:$28 sps:$4 sm:$0xff]  }
 0x11a   :  { %1720 = vmatprep.subr.bf16.mxu0 %v4489_v33  ;;  %1802 = vmatprep.subr.bf16.mxu1 %v4492_v34  ;;  %v4557_v33 = vld [vmem:[%s6342_s3 + $0x168] ss:$28 sps:$4 sm:$0xff]   ;;  %v4560_v34 = vld [vmem:[%s6342_s3 + $0x19c] ss:$28 sps:$4 sm:$0xff]  }
 0x11d   :  { %1721 = vmatpush1.bf16.msra.mxu0 %v4487_v35  ;;  %1803 = vmatpush1.bf16.msra.mxu1 %v4490_v36  ;;  %v4561_v35 = vld [vmem:[%s6342_s3 + $0x360] ss:$28 sps:$4 sm:$0xff]   ;;  %v4558_v36 = vld [vmem:[%s6342_s3 + $0x198] ss:$28 sps:$4 sm:$0xff]  }
 0x11e   :  { %1722 = vmatprep.subr.bf16.mxu0 %v4495_v37  ;;  %1804 = vmatprep.subr.bf16.mxu1 %v4498_v38  ;;  %v4562_v37 = vld [vmem:[%s6342_s3 + $0x1a0] ss:$28 sps:$4 sm:$0xff]   ;;  %v4565_v38 = vld [vmem:[%s6342_s3 + $0x1d4] ss:$28 sps:$4 sm:$0xff]  }
 0x121   :  { %1723 = vmatpush1.bf16.msra.mxu0 %v4493_v39  ;;  %1805 = vmatpush1.bf16.msra.mxu1 %v4496_v40  ;;  %v4563_v39 = vld [vmem:[%s6342_s3 + $0x1d0] ss:$28 sps:$4 sm:$0xff]   ;;  %v4566_v40 = vld [vmem:[%s6342_s3 + $0x398] ss:$28 sps:$4 sm:$0xff]  }
 0x122   :  { %1724 = vmatprep.subr.bf16.mxu0 %v4501_v41  ;;  %1806 = vmatprep.subr.bf16.mxu1 %v4504_v46  ;;  %v4569_v41 = vld [vmem:[%s6342_s3 + $0x20c] ss:$28 sps:$4 sm:$0xff]  }
 0x123   :  { %v4567_v46 = vld [vmem:[%s6342_s3 + $0x208] ss:$28 sps:$4 sm:$0xff]  }
 0x125   :  { %1725 = vmatpush1.bf16.msra.mxu0 %v4499_v48  ;;  %1807 = vmatpush1.bf16.msra.mxu1 %v4502_v49  ;;  %v4570_v48 = vld [vmem:[%s6342_s3 + $0x3d0] ss:$28 sps:$4 sm:$0xff]   ;;  %v4573_v49 = vld [vmem:[%s6342_s3 + $0x244] ss:$28 sps:$4 sm:$0xff]  }
 0x126   :  { %1726 = vmatprep.subr.bf16.mxu0 %v4507_v51  ;;  %1808 = vmatprep.subr.bf16.mxu1 %v4510_v52  ;;  %v4574_v51 = vld [vmem:[%s6342_s3 + $0x408] ss:$28 sps:$4 sm:$0xff]   ;;  %v4577_v52 = vld [vmem:[%s6342_s3 + $0x27c] ss:$28 sps:$4 sm:$0xff]  }
 0x129   :  { %1727 = vmatpush1.bf16.msra.mxu0 %v4505_v53  ;;  %1809 = vmatpush1.bf16.msra.mxu1 %v4508_v54  ;;  %v4575_v53 = vld [vmem:[%s6342_s3 + $0x278] ss:$28 sps:$4 sm:$0xff]   ;;  %v4578_v54 = vld [vmem:[%s6342_s3 + $0x440] ss:$28 sps:$4 sm:$0xff]  }
 0x12a   :  { %1728 = vmatprep.subr.bf16.mxu0 %v4513_v55  ;;  %1810 = vmatprep.subr.bf16.mxu1 %v4516_v57  ;;  %v4579_v55 = vld [vmem:[%s6342_s3 + $0x2b0] ss:$28 sps:$4 sm:$0xff]   ;;  %v4582_v57 = vld [vmem:[%s6342_s3 + $0x478] ss:$28 sps:$4 sm:$0xff]  }
 0x12d   :  { %1729 = vmatpush1.bf16.msra.mxu0 %v4511_v58  ;;  %1811 = vmatpush1.bf16.msra.mxu1 %v4514_v60  ;;  %v4585_v58 = vld [vmem:[%s6342_s3 + $0x2ec] ss:$28 sps:$4 sm:$0xff]  }
 0x12e   :  { %1730 = vmatprep.subr.bf16.mxu0 %v4519_v62  ;;  %1812 = vmatprep.subr.bf16.mxu1 %v4522_v0  ;;  %v4583_v60 = vld [vmem:[%s6342_s3 + $0x2e8] ss:$28 sps:$4 sm:$0xff]   ;;  %v4587_v0 = vld [vmem:[%s6342_s3 + $0x320] ss:$28 sps:$4 sm:$0xff]  }
 0x12f   :  { %v4589_v62 = vld [vmem:[%s6342_s3 + $0x324] ss:$28 sps:$4 sm:$0xff]  }
 0x131   :  { %1731 = vmatpush1.bf16.msra.mxu0 %v4517_v1  ;;  %1813 = vmatpush1.bf16.msra.mxu1 %v4520_v3  ;;  %v4590_v1 = vld [vmem:[%s6342_s3 + $0x4e8] ss:$28 sps:$4 sm:$0xff]   ;;  %v4593_v3 = vld [vmem:[%s6342_s3 + $0x35c] ss:$28 sps:$4 sm:$0xff]  }
 0x132   :  { %1829 = vmatprep.subr.bf16.mxu0 %v4525_v5  ;;  %4123 = vmatprep.subr.bf16.mxu1 %v4526_v6  ;;  %v4594_v5 = vld [vmem:[%s6342_s3 + $0x520] ss:$28 sps:$4 sm:$0xff]   ;;  %v4597_v6 = vld [vmem:[%s6342_s3 + $0x394] ss:$28 sps:$4 sm:$0xff]  }
 0x134   :  { %1739 = vmatmul.mubr.bf16.vlgmr.msra.gmra.mrb[4].mxu0 %v5452_v8  ;;  %1821 = vmatmul.mubr.bf16.vlgmr.msra.gmra.mrb[4].mxu1 %v5452_v8 }
 0x135   :  { %1830 = vmatpush1.bf16.msra.mxu0 %v4523_v7  ;;  %1861 = vmatprep.mubr.bf16.mxu0 %v5268_v59  ;;  %v4595_v7 = vld [vmem:[%s6342_s3 + $0x390] ss:$28 sps:$4 sm:$0xff]  }
 0x136   :  { %4124 = vmatpush3.bf16.msra.mxu1 %v4527_v9  ;;  %1943 = vmatprep.mubr.bf16.mxu1 %v5268_v59  ;;  %v4537_v59 = vld [vmem:[%s6342_s3 + $0x88] ss:$28 sps:$4 sm:$0xff]   ;;  %v4598_v9 = vld [vmem:[%s6342_s3 + $0x558] ss:$28 sps:$4 sm:$0xff]  }
 0x137   :  { %1831 = vmatprep.subr.bf16.mxu0 %v4530_v10  ;;  %4125 = vmatprep.subr.bf16.mxu1 %v4531_v11  ;;  %v4601_v10 = vld [vmem:[%s6342_s3 + $0x3cc] ss:$28 sps:$4 sm:$0xff]  }
 0x138   :  { %v4599_v11 = vld [vmem:[%s6342_s3 + $0x3c8] ss:$28 sps:$4 sm:$0xff]  }
 0x139   :  { %1832 = vmatpush1.bf16.msra.mxu0 %v4528_v12  ;;  %v4602_v12 = vld [vmem:[%s6342_s3 + $0x590] ss:$28 sps:$4 sm:$0xff]  }
 0x13a   :  { %4126 = vmatpush3.bf16.msra.mxu1 %v4532_v13  ;;  %1833 = vmatprep.subr.bf16.mxu0 %v4535_v14  ;;  %v4605_v13 = vld [vmem:[%s6342_s3 + $0x404] ss:$28 sps:$4 sm:$0xff]   ;;  %v4609_v14 = vld [vmem:[%s6342_s3 + $0x43c] ss:$28 sps:$4 sm:$0xff]  }
 0x13b   :  { %4127 = vmatprep.subr.bf16.mxu1 %v4536_v15  ;;  %v4607_v15 = vld [vmem:[%s6342_s3 + $0x438] ss:$28 sps:$4 sm:$0xff]  }
 0x13d   :  { %1834 = vmatpush1.bf16.msra.mxu0 %v4533_v16  ;;  %v4610_v16 = vld [vmem:[%s6342_s3 + $0x600] ss:$28 sps:$4 sm:$0xff]  }
 0x13e   :  { %4128 = vmatpush3.bf16.msra.mxu1 %v4537_v59  ;;  %1835 = vmatprep.subr.bf16.mxu0 %v4540_v17  ;;  %v4613_v59 = vld [vmem:[%s6342_s3 + $0x474] ss:$28 sps:$4 sm:$0xff]  }
 0x13f   :  { %4129 = vmatprep.subr.bf16.mxu1 %v4541_v19  ;;  %v4611_v17 = vld [vmem:[%s6342_s3 + $0x470] ss:$28 sps:$4 sm:$0xff]   ;;  %v4614_v19 = vld [vmem:[%s6342_s3 + $0x638] ss:$28 sps:$4 sm:$0xff]  }
 0x141   :  { %1836 = vmatpush1.bf16.msra.mxu0 %v4538_v20  ;;  %v4617_v20 = vld [vmem:[%s6342_s3 + $0x4ac] ss:$28 sps:$4 sm:$0xff]  }
 0x142   :  { %4130 = vmatpush3.bf16.msra.mxu1 %v4542_v21  ;;  %1837 = vmatprep.subr.bf16.mxu0 %v4545_v22  ;;  %v4641_v21 = vld [vmem:[%s6344_s5 + $0x4] ss:$12 sps:$4 sm:$0xff]  }
 0x143   :  { %4131 = vmatprep.subr.bf16.mxu1 %v4546_v23  ;;  %v4615_v22 = vld [vmem:[%s6342_s3 + $0x4a8] ss:$28 sps:$4 sm:$0xff]  }
 0x144   :  { %v4620_v23 = vld [vmem:[%s6342_s3 + $0x4e4] ss:$28 sps:$4 sm:$0xff]  }
 0x145   :  { %1838 = vmatpush1.bf16.msra.mxu0 %v4543_v24  ;;  %v4639_v24 = vld [vmem:[%s6344_s5] ss:$12 sps:$4 sm:$0xff]  }
 0x146   :  { %4132 = vmatpush3.bf16.msra.mxu1 %v4547_v25  ;;  %1839 = vmatprep.subr.bf16.mxu0 %v4550_v26  ;;  %v4644_v25 = vld [vmem:[%s6344_s5 + $0x1c] ss:$12 sps:$4 sm:$0xff]  }
 0x147   :  { %4133 = vmatprep.subr.bf16.mxu1 %v4551_v27  ;;  %v4618_v26 = vld [vmem:[%s6342_s3 + $0x4e0] ss:$28 sps:$4 sm:$0xff]  }
 0x148   :  { %v4623_v27 = vld [vmem:[%s6342_s3 + $0x51c] ss:$28 sps:$4 sm:$0xff]  }
 0x149   :  { %1840 = vmatpush1.bf16.msra.mxu0 %v4548_v28  ;;  %v4642_v28 = vld [vmem:[%s6344_s5 + $0x18] ss:$12 sps:$4 sm:$0xff]  }
 0x14a   :  { %4134 = vmatpush3.bf16.msra.mxu1 %v4552_v29  ;;  %1841 = vmatprep.subr.bf16.mxu0 %v4555_v30  ;;  %v4647_v29 = vld [vmem:[%s6344_s5 + $0x34] ss:$12 sps:$4 sm:$0xff]  }
 0x14b   :  { %4135 = vmatprep.subr.bf16.mxu1 %v4556_v31  ;;  %v4621_v30 = vld [vmem:[%s6342_s3 + $0x518] ss:$28 sps:$4 sm:$0xff]  }
 0x14c   :  { %v4626_v31 = vld [vmem:[%s6342_s3 + $0x554] ss:$28 sps:$4 sm:$0xff]  }
 0x14d   :  { %1842 = vmatpush1.bf16.msra.mxu0 %v4553_v32  ;;  %v4645_v32 = vld [vmem:[%s6344_s5 + $0x30] ss:$12 sps:$4 sm:$0xff]  }
 0x14e   :  { %4136 = vmatpush3.bf16.msra.mxu1 %v4557_v33  ;;  %1843 = vmatprep.subr.bf16.mxu0 %v4560_v34  ;;  %v4650_v33 = vld [vmem:[%s6344_s5 + $0x4c] ss:$12 sps:$4 sm:$0xff]  }
 0x14f   :  { %4137 = vmatprep.subr.bf16.mxu1 %v4561_v35  ;;  %v4624_v34 = vld [vmem:[%s6342_s3 + $0x550] ss:$28 sps:$4 sm:$0xff]  }
 0x150   :  { %v4629_v35 = vld [vmem:[%s6342_s3 + $0x58c] ss:$28 sps:$4 sm:$0xff]  }
 0x151   :  { %1844 = vmatpush1.bf16.msra.mxu0 %v4558_v36  ;;  %v4648_v36 = vld [vmem:[%s6344_s5 + $0x48] ss:$12 sps:$4 sm:$0xff]  }
 0x152   :  { %4138 = vmatpush3.bf16.msra.mxu1 %v4562_v37  ;;  %1845 = vmatprep.subr.bf16.mxu0 %v4565_v38  ;;  %v4653_v37 = vld [vmem:[%s6344_s5 + $0x64] ss:$12 sps:$4 sm:$0xff]  }
 0x153   :  { %1951 = vmatprep.subr.bf16.mxu1 %v4897_v2  ;;  %v4627_v38 = vld [vmem:[%s6342_s3 + $0x588] ss:$28 sps:$4 sm:$0xff]  }
 0x155   :  { %1944 = vmatmul.mubr.bf16.vlgmr.msra.gmra.mrb[8].mxu1 %v5279_v63  ;;  %1846 = vmatpush1.bf16.msra.mxu0 %v4563_v39  ;;  %v4632_v39 = vld [vmem:[%s6342_s3 + $0x5c4] ss:$28 sps:$4 sm:$0xff]  }
 0x156   :  { %1952 = vmatpush1.bf16.msra.mxu1 %v4566_v40  ;;  %3938 = vmatprep.mubr.msk.bf16.mxu1 %vm1661_vm2, %v5317_v18  ;;  %v4651_v40 = vld [vmem:[%s6344_s5 + $0x60] ss:$12 sps:$4 sm:$0xff]  }
 0x157   :  { %1847 = vmatprep.subr.bf16.mxu0 %v4569_v41  ;;  %1953 = vmatprep.subr.bf16.mxu1 %v4897_v2  ;;  %v4656_v41 = vld [vmem:[%s6344_s5 + $0x7c] ss:$12 sps:$4 sm:$0xff]  }
 0x159   :  { %1848 = vmatpush1.bf16.msra.mxu0 %v4567_v46  ;;  %v4630_v46 = vld [vmem:[%s6342_s3 + $0x5c0] ss:$28 sps:$4 sm:$0xff]  }
 0x15a   :  { %1954 = vmatpush1.bf16.msra.mxu1 %v4570_v48  ;;  %1849 = vmatprep.subr.bf16.mxu0 %v4573_v49  ;;  %v4635_v48 = vld [vmem:[%s6342_s3 + $0x5fc] ss:$28 sps:$4 sm:$0xff]  }
 0x15b   :  { %1955 = vmatprep.subr.bf16.mxu1 %v4897_v2  ;;  %v4654_v49 = vld [vmem:[%s6344_s5 + $0x78] ss:$12 sps:$4 sm:$0xff]  }
 0x15d   :  { %1850 = vmatpush1.bf16.msra.mxu0 %v4571_v50  ;;  %v4659_v50 = vld [vmem:[%s6344_s5 + $0x94] ss:$12 sps:$4 sm:$0xff]  }
 0x15e   :  { %1956 = vmatpush1.bf16.msra.mxu1 %v4574_v51  ;;  %1851 = vmatprep.subr.bf16.mxu0 %v4577_v52  ;;  %v4633_v51 = vld [vmem:[%s6342_s3 + $0x5f8] ss:$28 sps:$4 sm:$0xff]  }
 0x15f   :  { %1957 = vmatprep.subr.bf16.mxu1 %v4897_v2  ;;  %v4638_v52 = vld [vmem:[%s6342_s3 + $0x634] ss:$28 sps:$4 sm:$0xff]  }
 0x161   :  { %1852 = vmatpush1.bf16.msra.mxu0 %v4575_v53  ;;  %v4657_v53 = vld [vmem:[%s6344_s5 + $0x90] ss:$12 sps:$4 sm:$0xff]  }
 0x162   :  { %1958 = vmatpush1.bf16.msra.mxu1 %v4578_v54  ;;  %1853 = vmatprep.subr.bf16.mxu0 %v4581_v44  ;;  %v4662_v54 = vld [vmem:[%s6344_s5 + $0xac] ss:$12 sps:$4 sm:$0xff]  }
 0x163   :  { %1959 = vmatprep.subr.bf16.mxu1 %v4897_v2  ;;  %v4636_v44 = vld [vmem:[%s6342_s3 + $0x630] ss:$28 sps:$4 sm:$0xff]  }
 0x165   :  { %1854 = vmatpush1.bf16.msra.mxu0 %v4579_v55  ;;  %v4660_v55 = vld [vmem:[%s6344_s5 + $0xa8] ss:$12 sps:$4 sm:$0xff]  }
 0x166   :  { %1960 = vmatpush1.bf16.msra.mxu1 %v4582_v57  ;;  %1855 = vmatprep.subr.bf16.mxu0 %v4585_v58  ;;  %v4666_v57 = vld [vmem:[%s6344_s5 + $0xc8] ss:$12 sps:$4 sm:$0xff]   ;;  %v4665_v58 = vld [vmem:[%s6344_s5 + $0xc4] ss:$12 sps:$4 sm:$0xff]  }
 0x167   :  { %1961 = vmatprep.subr.bf16.mxu1 %v4897_v2 }
 0x169   :  { %1856 = vmatpush1.bf16.msra.mxu0 %v4583_v60  ;;  %v4667_v60 = vld [vmem:[%s6344_s5 + $0x8] ss:$12 sps:$4 sm:$0xff]  }
 0x16a   :  { %1962 = vmatpush1.bf16.msra.mxu1 %v4586_v61  ;;  %1857 = vmatprep.subr.bf16.mxu0 %v4589_v62  ;;  %v4663_v61 = vld [vmem:[%s6344_s5 + $0xc0] ss:$12 sps:$4 sm:$0xff]  }
 0x16b   :  { %1963 = vmatprep.subr.bf16.mxu1 %v4897_v2  ;;  %v4671_v62 = vld [vmem:[%s6344_s5 + $0xe0] ss:$12 sps:$4 sm:$0xff]  }
 0x16d   :  { %1858 = vmatpush1.bf16.msra.mxu0 %v4587_v0  ;;  %v4670_v0 = vld [vmem:[%s6344_s5 + $0xdc] ss:$12 sps:$4 sm:$0xff]  }
 0x16e   :  { %1964 = vmatpush1.bf16.msra.mxu1 %v4590_v1  ;;  %1859 = vmatprep.subr.bf16.mxu0 %v4593_v3  ;;  %v4672_v1 = vld [vmem:[%s6344_s5 + $0x20] ss:$12 sps:$4 sm:$0xff]   ;;  %v4668_v3 = vld [vmem:[%s6344_s5 + $0xd8] ss:$12 sps:$4 sm:$0xff]  }
 0x16f   :  { %1965 = vmatprep.subr.bf16.mxu1 %v4897_v2 }
 0x171   :  { %1860 = vmatpush1.bf16.msra.mxu0 %v4591_v4  ;;  %v4676_v4 = vld [vmem:[%s6344_s5 + $0xf8] ss:$12 sps:$4 sm:$0xff]  }
 0x172   :  { %1966 = vmatpush1.bf16.msra.mxu1 %v4594_v5  ;;  %1870 = vmatprep.subr.bf16.mxu0 %v4597_v6  ;;  %v4677_v5 = vld [vmem:[%s6344_s5 + $0x38] ss:$12 sps:$4 sm:$0xff]   ;;  %v4673_v6 = vld [vmem:[%s6344_s5 + $0xf0] ss:$12 sps:$4 sm:$0xff]  }
 0x173   :  { %1967 = vmatprep.subr.bf16.mxu1 %v4897_v2 }
 0x174   :  { %1862 = vmatmul.mubr.bf16.vlgmr.msra.gmra.mrb[8].mxu0 %v5279_v63  ;;  %v4603_v63 = vld [vmem:[%s6342_s3 + $0x400] ss:$28 sps:$4 sm:$0xff]  }
 0x175   :  { %1871 = vmatpush1.bf16.msra.mxu0 %v4595_v7  ;;  %3937 = vmatprep.mubr.msk.bf16.mxu0 %vm1661_vm2, %v5317_v18  ;;  %v4606_v18 = vld [vmem:[%s6342_s3 + $0x5c8] ss:$28 sps:$4 sm:$0xff]   ;;  %v4681_v7 = vld [vmem:[%s6344_s5 + $0x110] ss:$12 sps:$4 sm:$0xff]  }
 0x176   :  { %1968 = vmatpush1.bf16.msra.mxu1 %v4598_v9  ;;  %1872 = vmatprep.subr.bf16.mxu0 %v4601_v10  ;;  %v4680_v9 = vld [vmem:[%s6344_s5 + $0x10c] ss:$12 sps:$4 sm:$0xff]   ;;  %v4682_v10 = vld [vmem:[%s6344_s5 + $0x50] ss:$12 sps:$4 sm:$0xff]  }
 0x177   :  { %1969 = vmatprep.subr.bf16.mxu1 %v4897_v2 }
 0x179   :  { %1873 = vmatpush1.bf16.msra.mxu0 %v4599_v11  ;;  %v4678_v11 = vld [vmem:[%s6344_s5 + $0x108] ss:$12 sps:$4 sm:$0xff]  }
 0x17a   :  { %1970 = vmatpush1.bf16.msra.mxu1 %v4602_v12  ;;  %1874 = vmatprep.subr.bf16.mxu0 %v4605_v13  ;;  %v4686_v12 = vld [vmem:[%s6344_s5 + $0x128] ss:$12 sps:$4 sm:$0xff]   ;;  %v4685_v13 = vld [vmem:[%s6344_s5 + $0x124] ss:$12 sps:$4 sm:$0xff]  }
 0x17b   :  { %1971 = vmatprep.subr.bf16.mxu1 %v4897_v2 }
 0x17d   :  { %1875 = vmatpush1.bf16.msra.mxu0 %v4603_v63  ;;  %v4687_v63 = vld [vmem:[%s6344_s5 + $0x68] ss:$12 sps:$4 sm:$0xff]  }
 0x17e   :  { %1972 = vmatpush1.bf16.msra.mxu1 %v4606_v18  ;;  %1876 = vmatprep.subr.bf16.mxu0 %v4609_v14  ;;  %v4683_v18 = vld [vmem:[%s6344_s5 + $0x120] ss:$12 sps:$4 sm:$0xff]  }
 0x17f   :  { %1973 = vmatprep.subr.bf16.mxu1 %v4897_v2  ;;  %v4691_v14 = vld [vmem:[%s6344_s5 + $0x140] ss:$12 sps:$4 sm:$0xff]  }
 0x181   :  { %1877 = vmatpush1.bf16.msra.mxu0 %v4607_v15  ;;  %v4690_v15 = vld [vmem:[%s6344_s5 + $0x13c] ss:$12 sps:$4 sm:$0xff]  }
 0x182   :  { %1974 = vmatpush1.bf16.msra.mxu1 %v4610_v16  ;;  %1878 = vmatprep.subr.bf16.mxu0 %v4613_v59  ;;  %v4692_v16 = vld [vmem:[%s6344_s5 + $0x80] ss:$12 sps:$4 sm:$0xff]   ;;  %v4688_v59 = vld [vmem:[%s6344_s5 + $0x138] ss:$12 sps:$4 sm:$0xff]  }
 0x183   :  { %1975 = vmatprep.subr.bf16.mxu1 %v4897_v2 }
 0x185   :  { %1879 = vmatpush1.bf16.msra.mxu0 %v4611_v17  ;;  %v4696_v17 = vld [vmem:[%s6344_s5 + $0x158] ss:$12 sps:$4 sm:$0xff]  }
 0x186   :  { %1976 = vmatpush1.bf16.msra.mxu1 %v4614_v19  ;;  %1880 = vmatprep.subr.bf16.mxu0 %v4617_v20  ;;  %v4695_v19 = vld [vmem:[%s6344_s5 + $0x154] ss:$12 sps:$4 sm:$0xff]   ;;  %v4697_v20 = vld [vmem:[%s6344_s5 + $0x98] ss:$12 sps:$4 sm:$0xff]  }
 0x187   :  { %3113 = vmatprep.subr.bf16.mxu1 %v4641_v21  ;;  %v4693_v21 = vld [vmem:[%s6344_s5 + $0x150] ss:$12 sps:$4 sm:$0xff]  }
 0x189   :  { %1984 = vmatmul.mubr.bf16.vlgmr.msra.gmra.mrb[12].mxu1 %v5452_v8  ;;  %1881 = vmatpush1.bf16.msra.mxu0 %v4615_v22  ;;  %v4701_v22 = vld [vmem:[%s6344_s5 + $0x170] ss:$12 sps:$4 sm:$0xff]  }
 0x18a   :  { %1882 = vmatprep.subr.bf16.mxu0 %v4620_v23  ;;  %3114 = vmatpush1.bf16.msra.mxu1 %v4639_v24  ;;  %v4700_v23 = vld [vmem:[%s6344_s5 + $0x16c] ss:$12 sps:$4 sm:$0xff]   ;;  %v4702_v24 = vld [vmem:[%s6344_s5 + $0xb0] ss:$12 sps:$4 sm:$0xff]  }
 0x18b   :  { %3115 = vmatprep.subr.bf16.mxu1 %v4644_v25  ;;  %v4698_v25 = vld [vmem:[%s6344_s5 + $0x168] ss:$12 sps:$4 sm:$0xff]  }
 0x18d   :  { %1883 = vmatpush1.bf16.msra.mxu0 %v4618_v26  ;;  %v4706_v26 = vld [vmem:[%s6344_s5 + $0x248] ss:$12 sps:$4 sm:$0xff]  }
 0x18e   :  { %1884 = vmatprep.subr.bf16.mxu0 %v4623_v27  ;;  %3116 = vmatpush1.bf16.msra.mxu1 %v4642_v28  ;;  %v4705_v27 = vld [vmem:[%s6344_s5 + $0x184] ss:$12 sps:$4 sm:$0xff]  }
 0x18f   :  { %3117 = vmatprep.subr.bf16.mxu1 %v4647_v29  ;;  %v5884_v28 = vld [vmem:[%s6343_s4] sm:$0x7f] }
 0x190   :  { %v585_v29 = vrot.slane %v5884_v28, %v5253_v43 }
 0x191   :  { %1885 = vmatpush1.bf16.msra.mxu0 %v4621_v30  ;;  %v589_v30 = vrot.slane %v5884_v28, %v5261_v45 }
 0x192   :  { %1886 = vmatprep.subr.bf16.mxu0 %v4626_v31  ;;  %3118 = vmatpush1.bf16.msra.mxu1 %v4645_v32  ;;  %v597_v31 = vrot.slane %v5884_v28, %v81_v56  ;;  %v4703_v56 = vld [vmem:[%s6344_s5 + $0x180] ss:$12 sps:$4 sm:$0xff]  }
 0x193   :  { %3119 = vmatprep.subr.bf16.mxu1 %v4650_v33 }
 0x195   :  { %1887 = vmatpush1.bf16.msra.mxu0 %v4624_v34 }
 0x196   :  { %1888 = vmatprep.subr.bf16.mxu0 %v4629_v35  ;;  %3120 = vmatpush1.bf16.msra.mxu1 %v4648_v36 }
 0x197   :  { %3121 = vmatprep.subr.bf16.mxu1 %v4653_v37 }
 0x199   :  { %1889 = vmatpush1.bf16.msra.mxu0 %v4627_v38 }
 0x19a   :  { %1890 = vmatprep.subr.bf16.mxu0 %v4632_v39  ;;  %3122 = vmatpush1.bf16.msra.mxu1 %v4651_v40 }
 0x19b   :  { %3123 = vmatprep.subr.bf16.mxu1 %v4656_v41 }
 0x19d   :  { %1891 = vmatpush1.bf16.msra.mxu0 %v4630_v46 }
 0x19e   :  { %1892 = vmatprep.subr.bf16.mxu0 %v4635_v48  ;;  %3124 = vmatpush1.bf16.msra.mxu1 %v4654_v49 }
 0x19f   :  { %3125 = vmatprep.subr.bf16.mxu1 %v4659_v50 }
 0x1a1   :  { %1893 = vmatpush1.bf16.msra.mxu0 %v4633_v51 }
 0x1a2   :  { %1894 = vmatprep.subr.bf16.mxu0 %v4638_v52  ;;  %3126 = vmatpush1.bf16.msra.mxu1 %v4657_v53 }
 0x1a3   :  { %3127 = vmatprep.subr.bf16.mxu1 %v4662_v54 }
 0x1a5   :  { %1895 = vmatpush1.bf16.msra.mxu0 %v4636_v44  ;;  %v4707_v44 = vld [vmem:[%s6344_s5 + $0x188] ss:$12 sps:$4 sm:$0xff]  }
 0x1a6   :  { %3128 = vmatpush1.bf16.msra.mxu1 %v4660_v55  ;;  %4145 = vmatprep.subr.bf16.mxu0 %v4666_v57  ;;  %v4710_v57 = vld [vmem:[%s6344_s5 + $0x19c] ss:$12 sps:$4 sm:$0xff]  }
 0x1a7   :  { %3129 = vmatprep.subr.bf16.mxu1 %v4665_v58  ;;  %v4711_v58 = vld [vmem:[%s6344_s5 + $0x260] ss:$12 sps:$4 sm:$0xff]  }
 0x1a8   :  { %1903 = vmatmul.mubr.bf16.vlgmr.msra.gmra.mrb[8].mxu0 %v5452_v8  ;;  %v4675_v8 = vld [vmem:[%s6344_s5 + $0xf4] ss:$12 sps:$4 sm:$0xff]  }
 0x1a9   :  { %4146 = vmatpush3.bf16.msra.mxu0 %v4667_v60 }
 0x1aa   :  { %3130 = vmatpush1.bf16.msra.mxu1 %v4663_v61  ;;  %4147 = vmatprep.subr.bf16.mxu0 %v4671_v62  ;;  %v4708_v61 = vld [vmem:[%s6344_s5 + $0x198] ss:$12 sps:$4 sm:$0xff]   ;;  %v4712_v62 = vld [vmem:[%s6344_s5 + $0x1a0] ss:$12 sps:$4 sm:$0xff]  }
 0x1ab   :  { %3131 = vmatprep.subr.bf16.mxu1 %v4670_v0  ;;  %v4715_v0 = vld [vmem:[%s6344_s5 + $0x1b4] ss:$12 sps:$4 sm:$0xff]  }
 0x1ad   :  { %4148 = vmatpush3.bf16.msra.mxu0 %v4672_v1  ;;  %v4716_v1 = vld [vmem:[%s6344_s5 + $0x278] ss:$12 sps:$4 sm:$0xff]  }
 0x1ae   :  { %3132 = vmatpush1.bf16.msra.mxu1 %v4668_v3  ;;  %4149 = vmatprep.subr.bf16.mxu0 %v4676_v4  ;;  %v4713_v3 = vld [vmem:[%s6344_s5 + $0x1b0] ss:$12 sps:$4 sm:$0xff]   ;;  %v4717_v4 = vld [vmem:[%s6344_s5 + $0x1b8] ss:$12 sps:$4 sm:$0xff]  }
 0x1af   :  { %3133 = vmatprep.subr.bf16.mxu1 %v4675_v8  ;;  %v4720_v8 = vld [vmem:[%s6344_s5 + $0x1cc] ss:$12 sps:$4 sm:$0xff]  }
 0x1b1   :  { %4150 = vmatpush3.bf16.msra.mxu0 %v4677_v5  ;;  %v4721_v5 = vld [vmem:[%s6344_s5 + $0x290] ss:$12 sps:$4 sm:$0xff]  }
 0x1b2   :  { %3134 = vmatpush1.bf16.msra.mxu1 %v4673_v6  ;;  %4151 = vmatprep.subr.bf16.mxu0 %v4681_v7  ;;  %v4718_v6 = vld [vmem:[%s6344_s5 + $0x1c8] ss:$12 sps:$4 sm:$0xff]   ;;  %v4722_v7 = vld [vmem:[%s6344_s5 + $0x1d0] ss:$12 sps:$4 sm:$0xff]  }
 0x1b3   :  { %3135 = vmatprep.subr.bf16.mxu1 %v4680_v9  ;;  %v4725_v9 = vld [vmem:[%s6344_s5 + $0x1e4] ss:$12 sps:$4 sm:$0xff]  }
 0x1b5   :  { %4152 = vmatpush3.bf16.msra.mxu0 %v4682_v10  ;;  %v4726_v10 = vld [vmem:[%s6344_s5 + $0x2a8] ss:$12 sps:$4 sm:$0xff]  }
 0x1b6   :  { %3136 = vmatpush1.bf16.msra.mxu1 %v4678_v11  ;;  %4153 = vmatprep.subr.bf16.mxu0 %v4686_v12  ;;  %v4723_v11 = vld [vmem:[%s6344_s5 + $0x1e0] ss:$12 sps:$4 sm:$0xff]   ;;  %v4727_v12 = vld [vmem:[%s6344_s5 + $0x1e8] ss:$12 sps:$4 sm:$0xff]  }
 0x1b7   :  { %3137 = vmatprep.subr.bf16.mxu1 %v4685_v13  ;;  %v593_v13 = vrot.slane %v5884_v28, %v5396_v47 }
 0x1b9   :  { %4154 = vmatpush3.bf16.msra.mxu0 %v4687_v63  ;;  %v4730_v63 = vld [vmem:[%s6344_s5 + $0x1fc] ss:$12 sps:$4 sm:$0xff]  }
 0x1ba   :  { %3138 = vmatpush1.bf16.msra.mxu1 %v4683_v18  ;;  %4155 = vmatprep.subr.bf16.mxu0 %v4691_v14  ;;  %v4731_v18 = vld [vmem:[%s6344_s5 + $0x2c0] ss:$12 sps:$4 sm:$0xff]   ;;  %v4728_v14 = vld [vmem:[%s6344_s5 + $0x1f8] ss:$12 sps:$4 sm:$0xff]  }
 0x1bb   :  { %3139 = vmatprep.subr.bf16.mxu1 %v4690_v15  ;;  %v4732_v15 = vld [vmem:[%s6344_s5 + $0x200] ss:$12 sps:$4 sm:$0xff]  }
 0x1bd   :  { %4156 = vmatpush3.bf16.msra.mxu0 %v4692_v16 }
 0x1be   :  { %3140 = vmatpush1.bf16.msra.mxu1 %v4688_v59  ;;  %4157 = vmatprep.subr.bf16.mxu0 %v4696_v17  ;;  %v4735_v59 = vld [vmem:[%s6344_s5 + $0x214] ss:$12 sps:$4 sm:$0xff]   ;;  %v4736_v17 = vld [vmem:[%s6344_s5 + $0x2d8] ss:$12 sps:$4 sm:$0xff]  }
 0x1bf   :  { %3141 = vmatprep.subr.bf16.mxu1 %v4695_v19  ;;  %v4733_v19 = vld [vmem:[%s6344_s5 + $0x210] ss:$12 sps:$4 sm:$0xff]  }
 0x1c1   :  { %4158 = vmatpush3.bf16.msra.mxu0 %v4697_v20  ;;  %v4737_v20 = vld [vmem:[%s6344_s5 + $0x218] ss:$12 sps:$4 sm:$0xff]  }
 0x1c2   :  { %3142 = vmatpush1.bf16.msra.mxu1 %v4693_v21  ;;  %4159 = vmatprep.subr.bf16.mxu0 %v4701_v22  ;;  %v4740_v21 = vld [vmem:[%s6344_s5 + $0x22c] ss:$12 sps:$4 sm:$0xff]  }
 0x1c3   :  { %3143 = vmatprep.subr.bf16.mxu1 %v4700_v23 }
 0x1c5   :  { %4160 = vmatpush3.bf16.msra.mxu0 %v4702_v24  ;;  %v4741_v24 = vld [vmem:[%s6344_s5 + $0x2f0] ss:$12 sps:$4 sm:$0xff]  }
 0x1c6   :  { %3144 = vmatpush1.bf16.msra.mxu1 %v4698_v25  ;;  %4167 = vmatprep.subr.bf16.mxu0 %v4706_v26 }
 0x1c7   :  { %3154 = vmatprep.subr.bf16.mxu1 %v4705_v27 }
 0x207   :  { %v1740_v32 = vpop.f32.mrb[4].mxu0  ;;  %v5893_v33 = vpop.f32.mrb[4].mxu1 }
 0x208   :  { %v4267_v34 = vadd.f32 %v1740_v32, %v585_v29  ;;  %v1742_v35 = vpop.f32.mrb[5].mxu0  ;;  %v1824_v36 = vpop.f32.mrb[5].mxu1  ;;  %v4269_v16 = vadd.f32 %v5893_v33, %v593_v13  ;;  %v4745_v33 = vld [vmem:[%s6344_s5 + $0x244] ss:$12 sps:$4 sm:$0xff]  }
 0x209   :  { %v4268_v37 = vadd.f32 %v1742_v35, %v589_v30  ;;  %v4270_v38 = vadd.f32 %v1824_v36, %v597_v31  ;;  %v1744_v39 = vpop.f32.mrb[6].mxu0  ;;  %v1826_v40 = vpop.f32.mrb[6].mxu1  ;;  %v4738_v30 = vld [vmem:[%s6344_s5 + $0x228] ss:$12 sps:$4 sm:$0xff]   ;;  %v4742_v31 = vld [vmem:[%s6344_s5 + $0x230] ss:$12 sps:$4 sm:$0xff]  }
 0x20a   :  { %v1991_v41 = vmul.f32 0.01, %v4267_v34  ;;  %v1745_v46 = vpop.f32.mrb[7].mxu0  ;;  %v1827_v48 = vpop.f32.mrb[7].mxu1  ;;  %v1993_v22 = vmul.f32 0.01, %v4269_v16 }
 0x20b   :  { %v1992_v49 = vmul.f32 0.01, %v4268_v37  ;;  %v1994_v50 = vmul.f32 0.01, %v4270_v38  ;;  %v4743_v35 = vld [vmem:[%s6344_s5 + $0x240] ss:$12 sps:$4 sm:$0xff]  }
 0x20c   :  { %v1998_v51 = vmax.f32 %v4267_v34, %v1991_v41  ;;  %v2000_v32 = vmax.f32 %v4269_v16, %v1993_v22  ;;  %v4785_v34 = vld [vmem:[%s6344_s5 + $0x3c8] ss:$12 sps:$4 sm:$0xff]   ;;  %v4790_v39 = vld [vmem:[%s6344_s5 + $0x3e0] ss:$12 sps:$4 sm:$0xff]   ;;  %v4746_v40 = vld [vmem:[%s6344_s5 + $0x258] ss:$12 sps:$4 sm:$0xff]  }
 0x20d   :  { %v1999_v52 = vmax.f32 %v4268_v37, %v1992_v49  ;;  %v2001_v53 = vmax.f32 %v4270_v38, %v1994_v50  ;;  %v4786_v36 = vld [vmem:[%s6344_s5 + $0x308] ss:$12 sps:$4 sm:$0xff]   ;;  %v4791_v41 = vld [vmem:[%s6344_s5 + $0x320] ss:$12 sps:$4 sm:$0xff]   ;;  %v4795_v48 = vld [vmem:[%s6344_s5 + $0x3f8] ss:$12 sps:$4 sm:$0xff]  }
 0x20e   :  { %v2005_v55 = vpack.c.bf16 %v1998_v51, %v1998_v51  ;;  %v6002_v37 = vpack.c.bf16 %v2000_v32, %v2000_v32  ;;  %v4748_v38 = vld [vmem:[%s6344_s5 + $0x25c] ss:$12 sps:$4 sm:$0xff]   ;;  %v4751_v46 = vld [vmem:[%s6344_s5 + $0x274] ss:$12 sps:$4 sm:$0xff]   ;;  %v4796_v50 = vld [vmem:[%s6344_s5 + $0x338] ss:$12 sps:$4 sm:$0xff]  }
 0x20f   :  { %v2006_v54 = vpack.c.bf16 %v1999_v52, %v1999_v52  ;;  %v2008_v60 = vpack.c.bf16 %v2001_v53, %v2001_v53  ;;  %v4749_v49 = vld [vmem:[%s6344_s5 + $0x270] ss:$12 sps:$4 sm:$0xff]   ;;  %v4754_v51 = vld [vmem:[%s6344_s5 + $0x28c] ss:$12 sps:$4 sm:$0xff]   ;;  %v4752_v53 = vld [vmem:[%s6344_s5 + $0x288] ss:$12 sps:$4 sm:$0xff]  }
 0x210   :  { %v4800_v52 = vld [vmem:[%s6344_s5 + $0x410] ss:$12 sps:$4 sm:$0xff]   ;;  %v4770_v13 = vld [vmem:[%s6344_s5 + $0x318] ss:$12 sps:$4 sm:$0xff]   ;;  %v4792_v32 = vld [vmem:[%s6344_s5 + $0x3a8] ss:$12 sps:$4 sm:$0xff]  }
 0x211   :  { %3145 = vmatprep.mubr.bf16.mxu1 %v2006_v54  ;;  %3309 = vmatprep.mubr.bf16.mxu0 %v2006_v54  ;;  %v4801_v54 = vld [vmem:[%s6344_s5 + $0x350] ss:$12 sps:$4 sm:$0xff]   ;;  %v4778_v16 = vld [vmem:[%s6344_s5 + $0x34c] ss:$12 sps:$4 sm:$0xff]  }
 0x212   :  { %3146 = vmatmul.mubr.bf16.vlgmr.msra.gmra.mrb[16].mxu1 %v2005_v55  ;;  %3310 = vmatmul.mubr.bf16.vlgmr.msra.gmra.mrb[12].mxu0 %v2005_v55  ;;  %v4755_v55 = vld [vmem:[%s6344_s5 + $0x2a0] ss:$12 sps:$4 sm:$0xff]  }
 0x213   :  { %3155 = vmatpush1.bf16.msra.mxu1 %v4703_v56  ;;  %4168 = vmatpush3.bf16.msra.mxu0 %v4707_v44  ;;  %v4757_v56 = vld [vmem:[%s6344_s5 + $0x2a4] ss:$12 sps:$4 sm:$0xff]   ;;  %v4805_v44 = vld [vmem:[%s6344_s5 + $0x428] ss:$12 sps:$4 sm:$0xff]  }
 0x214   :  { %3186 = vmatprep.mubr.bf16.mxu1 %v2008_v60  ;;  %3349 = vmatprep.mubr.bf16.mxu0 %v2008_v60  ;;  %v4810_v60 = vld [vmem:[%s6344_s5 + $0x440] ss:$12 sps:$4 sm:$0xff]  }
 0x215   :  { %3156 = vmatprep.subr.bf16.mxu1 %v4710_v57  ;;  %4169 = vmatprep.subr.bf16.mxu0 %v4711_v58  ;;  %v4806_v57 = vld [vmem:[%s6344_s5 + $0x368] ss:$12 sps:$4 sm:$0xff]  }
 0x216   :  { %v4760_v58 = vld [vmem:[%s6344_s5 + $0x2bc] ss:$12 sps:$4 sm:$0xff]  }
 0x217   :  { %3157 = vmatpush1.bf16.msra.mxu1 %v4708_v61  ;;  %4170 = vmatpush3.bf16.msra.mxu0 %v4712_v62  ;;  %v4758_v61 = vld [vmem:[%s6344_s5 + $0x2b8] ss:$12 sps:$4 sm:$0xff]   ;;  %v4811_v62 = vld [vmem:[%s6344_s5 + $0x380] ss:$12 sps:$4 sm:$0xff]  }
 0x218   :  { %3158 = vmatprep.subr.bf16.mxu1 %v4715_v0  ;;  %4171 = vmatprep.subr.bf16.mxu0 %v4716_v1  ;;  %v4763_v0 = vld [vmem:[%s6344_s5 + $0x2d4] ss:$12 sps:$4 sm:$0xff]   ;;  %v4815_v1 = vld [vmem:[%s6344_s5 + $0x458] ss:$12 sps:$4 sm:$0xff]  }
 0x21b   :  { %3159 = vmatpush1.bf16.msra.mxu1 %v4713_v3  ;;  %4172 = vmatpush3.bf16.msra.mxu0 %v4717_v4  ;;  %v4761_v3 = vld [vmem:[%s6344_s5 + $0x2d0] ss:$12 sps:$4 sm:$0xff]   ;;  %v4816_v4 = vld [vmem:[%s6344_s5 + $0x398] ss:$12 sps:$4 sm:$0xff]  }
 0x21c   :  { %3160 = vmatprep.subr.bf16.mxu1 %v4720_v8  ;;  %4173 = vmatprep.subr.bf16.mxu0 %v4721_v5  ;;  %v4766_v8 = vld [vmem:[%s6344_s5 + $0x2ec] ss:$12 sps:$4 sm:$0xff]   ;;  %v4820_v5 = vld [vmem:[%s6344_s5 + $0x470] ss:$12 sps:$4 sm:$0xff]  }
 0x21f   :  { %3161 = vmatpush1.bf16.msra.mxu1 %v4718_v6  ;;  %4174 = vmatpush3.bf16.msra.mxu0 %v4722_v7  ;;  %v4764_v6 = vld [vmem:[%s6344_s5 + $0x2e8] ss:$12 sps:$4 sm:$0xff]   ;;  %v4821_v7 = vld [vmem:[%s6344_s5 + $0x3b0] ss:$12 sps:$4 sm:$0xff]  }
 0x220   :  { %3162 = vmatprep.subr.bf16.mxu1 %v4725_v9  ;;  %4175 = vmatprep.subr.bf16.mxu0 %v4726_v10  ;;  %v4769_v9 = vld [vmem:[%s6344_s5 + $0x304] ss:$12 sps:$4 sm:$0xff]   ;;  %v4767_v10 = vld [vmem:[%s6344_s5 + $0x300] ss:$12 sps:$4 sm:$0xff]  }
 0x223   :  { %3163 = vmatpush1.bf16.msra.mxu1 %v4723_v11  ;;  %4176 = vmatpush3.bf16.msra.mxu0 %v4727_v12  ;;  %v4772_v11 = vld [vmem:[%s6344_s5 + $0x31c] ss:$12 sps:$4 sm:$0xff]   ;;  %v4898_v12 = vmov 0.0  }
 0x224   :  { %3164 = vmatprep.subr.bf16.mxu1 %v4730_v63  ;;  %4177 = vmatprep.subr.bf16.mxu0 %v4731_v18  ;;  %v608_v63 = vsub.s32 6, %v5250_v42  ;;  %v4775_v18 = vld [vmem:[%s6344_s5 + $0x334] ss:$12 sps:$4 sm:$0xff]  }
 0x227   :  { %3165 = vmatpush1.bf16.msra.mxu1 %v4728_v14  ;;  %4178 = vmatpush3.bf16.msra.mxu0 %v4732_v15  ;;  %v4773_v14 = vld [vmem:[%s6344_s5 + $0x330] ss:$12 sps:$4 sm:$0xff]   ;;  %v609_v15 = vrot.slane %v5884_v28, %v608_v63  ;;  %v4838_v63 = vld [vmem:[%s6344_s5 + $0x498] ss:$12 sps:$4 sm:$0xff]  }
 0x228   :  { %v4139_v23 = vpop.f32.mrb[8].mxu1  ;;  %3166 = vmatprep.subr.bf16.mxu1 %v4735_v59  ;;  %4179 = vmatprep.subr.bf16.mxu0 %v4736_v17  ;;  %v4776_v17 = vld [vmem:[%s6344_s5 + $0x348] ss:$12 sps:$4 sm:$0xff]  }
 0x229   :  { %v4140_v25 = vpop.f32.mrb[9].mxu1 }
 0x22a   :  { %v5982_v26 = vadd.f32 %v4140_v25, %v4139_v23  ;;  %v4142_v27 = vpop.f32.mrb[10].mxu1  ;;  %v4779_v25 = vld [vmem:[%s6344_s5 + $0x360] ss:$12 sps:$4 sm:$0xff]  }
 0x22b   :  { %v4143_v29 = vpop.f32.mrb[11].mxu1  ;;  %3167 = vmatpush1.bf16.msra.mxu1 %v4733_v19  ;;  %4180 = vmatpush3.bf16.msra.mxu0 %v4737_v20  ;;  %v4781_v20 = vld [vmem:[%s6344_s5 + $0x364] ss:$12 sps:$4 sm:$0xff]  }
 0x22c   :  { %3168 = vmatprep.subr.bf16.mxu1 %v4740_v21  ;;  %4181 = vmatprep.subr.bf16.mxu0 %v4741_v24  ;;  %v1946_v59 = vadd.f32 %v5982_v26, %v609_v15  ;;  %v4784_v26 = vld [vmem:[%s6344_s5 + $0x37c] ss:$12 sps:$4 sm:$0xff]   ;;  %v4782_v27 = vld [vmem:[%s6344_s5 + $0x378] ss:$12 sps:$4 sm:$0xff]   ;;  %v4789_v29 = vld [vmem:[%s6344_s5 + $0x394] ss:$12 sps:$4 sm:$0xff]  }
 0x22d   :  { %v4844_v15 = vld [vmem:[%s6344_s5 + $0x4b4] ss:$12 sps:$4 sm:$0xff]  }
 0x22f   :  { %3169 = vmatpush1.bf16.msra.mxu1 %v4738_v30  ;;  %4182 = vmatpush3.bf16.msra.mxu0 %v4742_v31  ;;  %v4787_v30 = vld [vmem:[%s6344_s5 + $0x390] ss:$12 sps:$4 sm:$0xff]   ;;  %v4794_v31 = vld [vmem:[%s6344_s5 + $0x3ac] ss:$12 sps:$4 sm:$0xff]  }
 0x230   :  { %3170 = vmatprep.subr.bf16.mxu1 %v4745_v33  ;;  %4189 = vmatprep.subr.bf16.mxu0 %v4785_v34  ;;  %v4799_v33 = vld [vmem:[%s6344_s5 + $0x3c4] ss:$12 sps:$4 sm:$0xff]   ;;  %v4797_v34 = vld [vmem:[%s6344_s5 + $0x3c0] ss:$12 sps:$4 sm:$0xff]  }
 0x232   :  { %3350 = vmatmul.mubr.bf16.vlgmr.msra.gmra.mrb[16].mxu0 %v6002_v37 }
 0x233   :  { %3171 = vmatpush1.bf16.msra.mxu1 %v4743_v35  ;;  %4190 = vmatpush3.bf16.msra.mxu0 %v4786_v36  ;;  %v4804_v35 = vld [vmem:[%s6344_s5 + $0x3dc] ss:$12 sps:$4 sm:$0xff]   ;;  %v4802_v36 = vld [vmem:[%s6344_s5 + $0x3d8] ss:$12 sps:$4 sm:$0xff]  }
 0x234   :  { %3172 = vmatprep.subr.bf16.mxu1 %v4748_v38  ;;  %4191 = vmatprep.subr.bf16.mxu0 %v4790_v39  ;;  %v600_v38 = vsub.s32 4, %v5250_v42  ;;  %v604_v39 = vsub.s32 5, %v5250_v42  ;;  %v4812_v42 = vld [vmem:[%s6344_s5 + $0x408] ss:$12 sps:$4 sm:$0xff]  }
 0x237   :  { %3173 = vmatpush1.bf16.msra.mxu1 %v4746_v40  ;;  %4192 = vmatpush3.bf16.msra.mxu0 %v4791_v41  ;;  %v4807_v40 = vld [vmem:[%s6344_s5 + $0x3f0] ss:$12 sps:$4 sm:$0xff]   ;;  %v601_v41 = vrot.slane %v5884_v28, %v600_v38 }
 0x238   :  { %3174 = vmatprep.subr.bf16.mxu1 %v4751_v46  ;;  %4193 = vmatprep.subr.bf16.mxu0 %v4795_v48  ;;  %v4814_v46 = vld [vmem:[%s6344_s5 + $0x40c] ss:$12 sps:$4 sm:$0xff]   ;;  %v605_v48 = vrot.slane %v5884_v28, %v604_v39  ;;  %v4863_v39 = vld [vmem:[%s6346_s7 + $0x60] sm:$0xff]  }
 0x239   :  { %v4817_v28 = vld [vmem:[%s6344_s5 + $0x420] ss:$12 sps:$4 sm:$0xff]   ;;  %v4862_v38 = vld [vmem:[%s6346_s7 + $0x18] sm:$0xff]  }
 0x23b   :  { %3175 = vmatpush1.bf16.msra.mxu1 %v4749_v49  ;;  %4194 = vmatpush3.bf16.msra.mxu0 %v4796_v50 }
 0x23c   :  { %3176 = vmatprep.subr.bf16.mxu1 %v4754_v51  ;;  %4195 = vmatprep.subr.bf16.mxu0 %v4800_v52  ;;  %v4819_v52 = vld [vmem:[%s6344_s5 + $0x424] ss:$12 sps:$4 sm:$0xff]  }
 0x23f   :  { %3177 = vmatpush1.bf16.msra.mxu1 %v4752_v53  ;;  %4196 = vmatpush3.bf16.msra.mxu0 %v4801_v54 }
 0x240   :  { %3178 = vmatprep.subr.bf16.mxu1 %v4757_v56  ;;  %4197 = vmatprep.subr.bf16.mxu0 %v4805_v44 }
 0x243   :  { %3179 = vmatpush1.bf16.msra.mxu1 %v4755_v55  ;;  %4198 = vmatpush3.bf16.msra.mxu0 %v4806_v57 }
 0x244   :  { %3180 = vmatprep.subr.bf16.mxu1 %v4760_v58  ;;  %4199 = vmatprep.subr.bf16.mxu0 %v4810_v60  ;;  %v4824_v58 = vld [vmem:[%s6344_s5 + $0x43c] ss:$12 sps:$4 sm:$0xff]  }
 0x247   :  { %3181 = vmatpush1.bf16.msra.mxu1 %v4758_v61  ;;  %4200 = vmatpush3.bf16.msra.mxu0 %v4811_v62  ;;  %v4822_v62 = vld [vmem:[%s6344_s5 + $0x438] ss:$12 sps:$4 sm:$0xff]  }
 0x248   :  { %3182 = vmatprep.subr.bf16.mxu1 %v4763_v0  ;;  %4201 = vmatprep.subr.bf16.mxu0 %v4815_v1  ;;  %v4825_v0 = vld [vmem:[%s6344_s5 + $0x488] ss:$12 sps:$4 sm:$0xff]  }
 0x24b   :  { %3183 = vmatpush1.bf16.msra.mxu1 %v4761_v3  ;;  %4202 = vmatpush3.bf16.msra.mxu0 %v4816_v4  ;;  %v4828_v3 = vld [vmem:[%s6344_s5 + $0x454] ss:$12 sps:$4 sm:$0xff]   ;;  %v4826_v4 = vld [vmem:[%s6344_s5 + $0x450] ss:$12 sps:$4 sm:$0xff]  }
 0x24c   :  { %3184 = vmatprep.subr.bf16.mxu1 %v4766_v8  ;;  %4203 = vmatprep.subr.bf16.mxu0 %v4820_v5  ;;  %v4829_v8 = vld [vmem:[%s6344_s5 + $0x4a0] ss:$12 sps:$4 sm:$0xff]  }
 0x24d   :  { %v4832_v5 = vld [vmem:[%s6344_s5 + $0x46c] ss:$12 sps:$4 sm:$0xff]  }
 0x24f   :  { %3185 = vmatpush1.bf16.msra.mxu1 %v4764_v6  ;;  %4204 = vmatpush3.bf16.msra.mxu0 %v4821_v7  ;;  %v4830_v6 = vld [vmem:[%s6344_s5 + $0x468] ss:$12 sps:$4 sm:$0xff]   ;;  %v4833_v7 = vld [vmem:[%s6344_s5 + $0x4b8] ss:$12 sps:$4 sm:$0xff]  }
 0x250   :  { %3195 = vmatprep.subr.bf16.mxu1 %v4769_v9  ;;  %4243 = vmatprep.subr.bf16.mxu0 %v4898_v12  ;;  %v4836_v9 = vld [vmem:[%s6344_s5 + $0x484] ss:$12 sps:$4 sm:$0xff]  }
 0x252   :  { %3187 = vmatmul.mubr.bf16.vlgmr.msra.gmra.mrb[16].mxu1 %v6002_v37  ;;  %v4809_v37 = vld [vmem:[%s6344_s5 + $0x3f4] ss:$12 sps:$4 sm:$0xff]  }
 0x253   :  { %3196 = vmatpush1.bf16.msra.mxu1 %v4767_v10  ;;  %v4834_v10 = vld [vmem:[%s6344_s5 + $0x480] ss:$12 sps:$4 sm:$0xff]  }
 0x254   :  { %3197 = vmatprep.subr.bf16.mxu1 %v4772_v11  ;;  %v4837_v11 = vld [vmem:[%s6344_s5 + $0x4d0] ss:$12 sps:$4 sm:$0xff]  }
 0x257   :  { %3198 = vmatpush1.bf16.msra.mxu1 %v4770_v13  ;;  %v4840_v13 = vld [vmem:[%s6344_s5 + $0x49c] ss:$12 sps:$4 sm:$0xff]  }
 0x258   :  { %3199 = vmatprep.subr.bf16.mxu1 %v4775_v18  ;;  %v4841_v18 = vld [vmem:[%s6344_s5 + $0x4e8] ss:$12 sps:$4 sm:$0xff]  }
 0x25b   :  { %3200 = vmatpush1.bf16.msra.mxu1 %v4773_v14 }
 0x25c   :  { %v1985_v19 = vpop.f32.mrb[12].mxu1  ;;  %3201 = vmatprep.subr.bf16.mxu1 %v4778_v16  ;;  %v4842_v16 = vld [vmem:[%s6344_s5 + $0x4b0] ss:$12 sps:$4 sm:$0xff]  }
 0x25d   :  { %v6121_v21 = vadd.f32 %v1985_v19, %v1946_v59  ;;  %v1987_v22 = vpop.f32.mrb[13].mxu1  ;;  %v4845_v59 = vld [vmem:[%s6344_s5 + $0x500] ss:$12 sps:$4 sm:$0xff]  }
 0x25e   :  { %v1988_v23 = vpop.f32.mrb[14].mxu1  ;;  %v4848_v19 = vld [vmem:[%s6344_s5 + $0x4cc] ss:$12 sps:$4 sm:$0xff]  }
 0x25f   :  { %v1989_v24 = vpop.f32.mrb[15].mxu1  ;;  %3202 = vmatpush1.bf16.msra.mxu1 %v4776_v17  ;;  %v1997_v14 = vmul.f32 0.01, %v6121_v21  ;;  %v4849_v22 = vld [vmem:[%s6344_s5 + $0x4e0] ss:$12 sps:$4 sm:$0xff]  }
 0x260   :  { %3203 = vmatprep.subr.bf16.mxu1 %v4781_v20  ;;  %v4854_v23 = vld [vmem:[%s6344_s5 + $0x4fc] ss:$12 sps:$4 sm:$0xff]   ;;  %v4852_v24 = vld [vmem:[%s6344_s5 + $0x4f8] ss:$12 sps:$4 sm:$0xff]  }
 0x261   :  { %v2004_v17 = vmax.f32 %v6121_v21, %v1997_v14  ;;  %v4851_v21 = vld [vmem:[%s6344_s5 + $0x4e4] ss:$12 sps:$4 sm:$0xff]  }
 0x263   :  { %3204 = vmatpush1.bf16.msra.mxu1 %v4779_v25  ;;  %v2011_v20 = vpack.c.bf16 %v2004_v17, %v2004_v17  ;;  %v4855_v25 = vld [vmem:[%s6346_s7 + $0x40] sm:$0xff]  }
 0x264   :  { %3205 = vmatprep.subr.bf16.mxu1 %v4784_v26  ;;  %v4856_v26 = vld [vmem:[%s6346_s7] sm:$0xff]  }
 0x267   :  { %3206 = vmatpush1.bf16.msra.mxu1 %v4782_v27  ;;  %v4857_v27 = vld [vmem:[%s6346_s7 + $0x48] sm:$0xff]  }
 0x268   :  { %3207 = vmatprep.subr.bf16.mxu1 %v4789_v29  ;;  %v4858_v29 = vld [vmem:[%s6346_s7 + $0x8] sm:$0xff]  }
 0x26b   :  { %3208 = vmatpush1.bf16.msra.mxu1 %v4787_v30  ;;  %v4859_v30 = vld [vmem:[%s6346_s7 + $0x50] sm:$0xff]  }
 0x26c   :  { %3209 = vmatprep.subr.bf16.mxu1 %v4794_v31  ;;  %v4860_v31 = vld [vmem:[%s6346_s7 + $0x10] sm:$0xff]  }
 0x26f   :  { %3210 = vmatpush1.bf16.msra.mxu1 %v4792_v32 }
 0x270   :  { %3211 = vmatprep.subr.bf16.mxu1 %v4799_v33 }
 0x273   :  { %3212 = vmatpush1.bf16.msra.mxu1 %v4797_v34 }
 0x274   :  { %3213 = vmatprep.subr.bf16.mxu1 %v4804_v35 }
 0x277   :  { %3214 = vmatpush1.bf16.msra.mxu1 %v4802_v36 }
 0x278   :  { %3215 = vmatprep.subr.bf16.mxu1 %v4809_v37  ;;  %v4861_v37 = vld [vmem:[%s6346_s7 + $0x58] sm:$0xff]  }
 0x27b   :  { %3216 = vmatpush1.bf16.msra.mxu1 %v4807_v40  ;;  %v1904_v49 = vpop.f32.mrb[8].mxu0  ;;  %v4864_v40 = vld [vmem:[%s6346_s7 + $0x20] sm:$0xff]  }
 0x27c   :  { %v4271_v50 = vadd.f32 %v1904_v49, %v601_v41  ;;  %v1906_v51 = vpop.f32.mrb[9].mxu0  ;;  %3217 = vmatprep.subr.bf16.mxu1 %v4814_v46  ;;  %v4865_v41 = vld [vmem:[%s6346_s7 + $0x68] sm:$0xff]   ;;  %v4868_v49 = vld [vmem:[%s6346_s7 + $0x30] sm:$0xff]  }
 0x27d   :  { %v4272_v53 = vadd.f32 %v1906_v51, %v605_v48  ;;  %v1908_v54 = vpop.f32.mrb[10].mxu0  ;;  %v4866_v46 = vld [vmem:[%s6346_s7 + $0x28] sm:$0xff]   ;;  %v4867_v48 = vld [vmem:[%s6346_s7 + $0x70] sm:$0xff]  }
 0x27e   :  { %v1995_v56 = vmul.f32 0.01, %v4271_v50  ;;  %v1909_v44 = vpop.f32.mrb[11].mxu0 }
 0x27f   :  { %v1996_v55 = vmul.f32 0.01, %v4272_v53  ;;  %3218 = vmatpush1.bf16.msra.mxu1 %v4812_v42  ;;  %v2228_v42 = vld [vmem:[%s6345_s6] sm:$0x7] }
 0x280   :  { %v2002_v57 = vmax.f32 %v4271_v50, %v1995_v56  ;;  %3219 = vmatprep.subr.bf16.mxu1 %v4819_v52  ;;  %v4869_v50 = vld [vmem:[%s6346_s7 + $0x78] sm:$0xff]   ;;  %v2241_v51 = vrot.slane %v2228_v42, %v5396_v47 }
 0x281   :  { %v2003_v60 = vmax.f32 %v4272_v53, %v1996_v55  ;;  %v4870_v52 = vld [vmem:[%s6346_s7 + $0x38] sm:$0xff]  }
 0x282   :  { %v2009_v1 = vpack.c.bf16 %v2002_v57, %v2002_v57 }
 0x283   :  { %v2010_v61 = vpack.c.bf16 %v2003_v60, %v2003_v60  ;;  %3220 = vmatpush1.bf16.msra.mxu1 %v4817_v28 }
 0x284   :  { %3221 = vmatprep.subr.bf16.mxu1 %v4824_v58 }
 0x285   :  { %3227 = vmatprep.mubr.bf16.mxu1 %v2010_v61  ;;  %3389 = vmatprep.mubr.bf16.mxu0 %v2010_v61 }
 0x286   :  { %3390 = vmatmul.mubr.bf16.vlgmr.msra.gmra.mrb[20].mxu0 %v2009_v1 }
 0x287   :  { %3222 = vmatpush1.bf16.msra.mxu1 %v4822_v62  ;;  %4244 = vmatpush3.bf16.msra.mxu0 %v4825_v0 }
 0x288   :  { %3223 = vmatprep.subr.bf16.mxu1 %v4828_v3  ;;  %4245 = vmatprep.subr.bf16.mxu0 %v4898_v12 }
 0x289   :  { %4255 = vmatprep.mubr.msk.bf16.mxu0 %vm4899_vm3, %v4898_v12 }
 0x28b   :  { %3224 = vmatpush1.bf16.msra.mxu1 %v4826_v4  ;;  %4246 = vmatpush3.bf16.msra.mxu0 %v4829_v8 }
 0x28c   :  { %3225 = vmatprep.subr.bf16.mxu1 %v4832_v5  ;;  %4247 = vmatprep.subr.bf16.mxu0 %v4898_v12 }
 0x28f   :  { %3226 = vmatpush1.bf16.msra.mxu1 %v4830_v6  ;;  %4248 = vmatpush3.bf16.msra.mxu0 %v4833_v7  ;;  %v2233_v6 = vrot.slane %v2228_v42, %v5253_v43  ;;  %v2237_v7 = vrot.slane %v2228_v42, %v5261_v45  ;;  %v4872_v43 = vld [vmem:[%s6346_s7 + $0x88] sm:$0xff]  }
 0x290   :  { %3236 = vmatprep.subr.bf16.mxu1 %v4836_v9  ;;  %4249 = vmatprep.subr.bf16.mxu0 %v4898_v12 }
 0x292   :  { %3228 = vmatmul.mubr.bf16.vlgmr.msra.gmra.mrb[16].mxu1 %v2009_v1 }
 0x293   :  { %3237 = vmatpush1.bf16.msra.mxu1 %v4834_v10  ;;  %4250 = vmatpush3.bf16.msra.mxu0 %v4837_v11 }
 0x294   :  { %3238 = vmatprep.subr.bf16.mxu1 %v4840_v13  ;;  %4251 = vmatprep.subr.bf16.mxu0 %v4898_v12 }
 0x295   :  { %3268 = vmatprep.mubr.bf16.mxu1 %v4897_v2  ;;  %v4846_v2 = vld [vmem:[%s6344_s5 + $0x4c8] ss:$12 sps:$4 sm:$0xff]  }
 0x297   :  { %3239 = vmatpush1.bf16.msra.mxu1 %v4838_v63  ;;  %4252 = vmatpush3.bf16.msra.mxu0 %v4841_v18 }
 0x298   :  { %3240 = vmatprep.subr.bf16.mxu1 %v4844_v15  ;;  %4253 = vmatprep.subr.bf16.mxu0 %v4898_v12 }
 0x29b   :  { %3241 = vmatpush1.bf16.msra.mxu1 %v4842_v16  ;;  %4254 = vmatpush3.bf16.msra.mxu0 %v4845_v59 }
 0x29c   :  { %3242 = vmatprep.subr.bf16.mxu1 %v4848_v19  ;;  %4218 = vmatprep.subr.bf16.mxu0 %v4855_v25  ;;  %v4871_v19 = vld [vmem:[%s6346_s7 + $0x80] sm:$0xff]   ;;  %s4900_s7 = smov [#allocation2]  }
 0x29d   :  { %s3688_s15 = sshll.u32 %s4900_s7, 4  ;;  %s3689_s15 = int_to_ptr.vmem [resolvable:$true] %s3688_s15 }
 0x29e   :  { %4256 = vmatmul.mubr.msk.bf16.vlgmr.msra.gmra.mrb[24].mxu0 %vm3109_vm4, %v2011_v20  ;;  %s4873_s16 = scalar_lea.vmem %s3689_s15, 128  ;;  %p4878_p1 = scmp.lt.s32.totalorder %s3689_s15, %s3689_s15 }
 0x29f   :  { %3243 = vmatpush1.bf16.msra.mxu1 %v4846_v2  ;;  %4219 = vmatpush3.bf16.msra.mxu0 %v4856_v26  ;;  %p4874_p0 = scmp.ne.s32.totalorder %s3689_s15, %s4873_s16  ;;  %p4879_p2 = scmp.lt.s32.totalorder %s4873_s16, %s4873_s16 }
 0x2a0   :  { %3244 = vmatprep.subr.bf16.mxu1 %v4851_v21  ;;  %4220 = vmatprep.subr.bf16.mxu0 %v4857_v27  ;;  %v4103_v27 = vld [vmem:[%s6347_s8] ss:$0 sm:$0xff] }
 0x2a1   :  { %p4880_p3 = por %p4879_p2, %p4878_p1 }
 0x2a3   :  { %3245 = vmatpush1.bf16.msra.mxu1 %v4849_v22  ;;  %4221 = vmatpush3.bf16.msra.mxu0 %v4858_v29  ;;  %p4881_p4 = pnand %p4880_p3, %p4874_p0 }
 0x2a4   :  { %3246 = vmatprep.subr.bf16.mxu1 %v4854_v23  ;;  %4222 = vmatprep.subr.bf16.mxu0 %v4859_v30 }
 0x2a7   :  { %3247 = vmatpush1.bf16.msra.mxu1 %v4852_v24  ;;  %4223 = vmatpush3.bf16.msra.mxu0 %v4860_v31 }
 0x2a8   :  { %4224 = vmatprep.subr.bf16.mxu0 %v4861_v37 }
 0x2aa   :  { %4101 = vmatmul.mubr.msk.bf16.vlgmr.msra.gmra.mrb[16].mxu1 %vm3109_vm4, %v2011_v20 }
 0x2ab   :  { %4225 = vmatpush3.bf16.msra.mxu0 %v4862_v38 }
 0x2ac   :  { %4226 = vmatprep.subr.bf16.mxu0 %v4863_v39 }
 0x2af   :  { %4227 = vmatpush3.bf16.msra.mxu0 %v4864_v40 }
 0x2b0   :  { %4228 = vmatprep.subr.bf16.mxu0 %v4865_v41 }
 0x2b3   :  { %4229 = vmatpush3.bf16.msra.mxu0 %v4866_v46 }
 0x2b4   :  { %4230 = vmatprep.subr.bf16.mxu0 %v4867_v48 }
 0x2b7   :  { %4231 = vmatpush3.bf16.msra.mxu0 %v4868_v49 }
 0x2b8   :  { %4232 = vmatprep.subr.bf16.mxu0 %v4869_v50 }
 0x2bb   :  { %4233 = vmatpush3.bf16.msra.mxu0 %v4870_v52 }
 0x2bc   :  { %4259 = vmatprep.subr.bf16.mxu0 %v4898_v12 }
 0x2e5   :  { %v4161_v32 = vpop.f32.mrb[12].mxu0 }
 0x2e6   :  { %v4162_v33 = vpop.f32.mrb[13].mxu0 }
 0x2e7   :  { %v4163_v34 = vadd.f32 %v4162_v33, %v4161_v32  ;;  %v4164_v35 = vpop.f32.mrb[14].mxu0 }
 0x2e8   :  { %v4165_v36 = vpop.f32.mrb[15].mxu0 }
 0x2e9   :  { %v3312_v56 = vadd.f32 %v4163_v34, %v2241_v51 }
 0x305   :  { %v4183_v53 = vpop.f32.mrb[16].mxu0 }
 0x306   :  { %v4184_v54 = vpop.f32.mrb[17].mxu0 }
 0x307   :  { %v4185_v44 = vadd.f32 %v4184_v54, %v4183_v53  ;;  %v4186_v55 = vpop.f32.mrb[18].mxu0 }
 0x308   :  { %v4187_v28 = vpop.f32.mrb[19].mxu0 }
 0x309   :  { %v3352_v57 = vadd.f32 %v4185_v44, %v3312_v56 }
 0x359   :  { %v4205_v58 = vpop.f32.mrb[20].mxu0 }
 0x35a   :  { %v4206_v60 = vpop.f32.mrb[21].mxu0 }
 0x35b   :  { %v4207_v61 = vadd.f32 %v4206_v60, %v4205_v58  ;;  %v4208_v62 = vpop.f32.mrb[22].mxu0 }
 0x35c   :  { %v4209_v47 = vpop.f32.mrb[23].mxu0 }
 0x35d   :  { %v3392_v0 = vadd.f32 %v4207_v61, %v3352_v57 }
 0x371   :  { %v3431_v1 = vpop.f32.mrb[24].mxu0 }
 0x372   :  { %v3432_v3 = vadd.f32 %v3431_v1, %v3392_v0  ;;  %v4257_v4 = vpop.f32.mrb[25].mxu0 }
 0x373   :  { %v3434_v8 = vpop.f32.mrb[26].mxu0 }
 0x374   :  { %v4258_v5 = vpop.f32.mrb[27].mxu0  ;;  %v3439_v2 = vmul.f32 0.01, %v3432_v3 }
 0x376   :  { %v3442_v45 = vmax.f32 %v3432_v3, %v3439_v2 }
 0x378   :  { %v3445_v21 = vpack.c.bf16 %v3442_v45, %v3442_v45 }
 0x37d   :  { %v3270_v9 = vpop.f32.mrb[16].mxu1 }
 0x37e   :  { %v4273_v10 = vadd.f32 %v3270_v9, %v2233_v6  ;;  %v3272_v11 = vpop.f32.mrb[17].mxu1 }
 0x37f   :  { %v4274_v13 = vadd.f32 %v3272_v11, %v2237_v7  ;;  %v3274_v63 = vpop.f32.mrb[18].mxu1 }
 0x380   :  { %v3437_v18 = vmul.f32 0.01, %v4273_v10  ;;  %v3275_v14 = vpop.f32.mrb[19].mxu1 }
 0x381   :  { %v3438_v15 = vmul.f32 0.01, %v4274_v13 }
 0x382   :  { %v3440_v16 = vmax.f32 %v4273_v10, %v3437_v18 }
 0x383   :  { %v3441_v59 = vmax.f32 %v4274_v13, %v3438_v15 }
 0x384   :  { %v3443_v20 = vpack.c.bf16 %v3440_v16, %v3440_v16 }
 0x385   :  { %v3444_v17 = vpack.c.bf16 %v3441_v59, %v3441_v59 }
 0x387   :  { %3633 = vmatprep.mubr.bf16.mxu0 %v3444_v17 }
 0x388   :  { %3634 = vmatmul.mubr.bf16.vlgmr.msra.gmra.mrb[28].mxu0 %v3443_v20 }
 0x389   :  { %4260 = vmatpush3.bf16.msra.mxu0 %v4871_v19  ;;  %4263 = vmatprep.mubr.msk.bf16.mxu0 %vm4899_vm3, %v4898_v12 }
 0x38a   :  { %4261 = vmatprep.subr.bf16.mxu0 %v4898_v12 }
 0x38d   :  { %4262 = vmatpush3.bf16.msra.mxu0 %v4872_v43 }
 0x390   :  { %4264 = vmatmul.mubr.msk.bf16.vlgmr.msra.gmra.mrb[32].mxu0 %vm3597_vm5, %v3445_v21 }
 0x45b   :  { %v4234_v22 = vpop.f32.mrb[28].mxu0 }
 0x45c   :  { %v4235_v23 = vpop.f32.mrb[29].mxu0 }
 0x45d   :  { %v4236_v24 = vadd.f32 %v4235_v23, %v4234_v22  ;;  %v4237_v25 = vpop.f32.mrb[30].mxu0 }
 0x45e   :  { %v4238_v26 = vpop.f32.mrb[31].mxu0 }
 0x45f   :  { %v3636_v29 = vadd.f32 %v4236_v24, %v4103_v27 }
 0x463   :  { %v3675_v30 = vpop.f32.mrb[32].mxu0 }
 0x464   :  { %v3676_v31 = vadd.f32 %v3675_v30, %v3636_v29  ;;  %v4265_v32 = vpop.f32.mrb[33].mxu0 }
 0x465   :  { %v3678_v12 = vpop.f32.mrb[34].mxu0 }
 0x466   :  { %3681 = vst [vmem:[#allocation2] sm:$0xff] %v3676_v31  ;;  %v4266_v33 = vpop.f32.mrb[35].mxu0 }
 0x467   :  { %4884 = shalt.err (!%p4881_p4)
}
 0x468   :  { %s4885_s8 = scalar_lea.hbm %s6348_s9, 128 }
 0x469   :  { %p4886_p5 = scmp.ne.s32.totalorder %s6348_s9, %s4885_s8  ;;  %p4889_p6 = scmp.lt.u32.totalorder %s4885_s8, %s6348_s9 }
 0x46b   :  { %p4891_p7 = pnand %p4889_p6, %p4886_p5 }
 0x46d   :  { %4894 = shalt.err (!%p4891_p7)
}
 0x46e   :  { %3691 = dma.vmem_to_hbm [thread:$0]  %s3689_s15, 128, %s6348_s9, [#allocation3]  }
 0x46f   :  { %4895 = dma.done.wait [#allocation3], 128  }
 0x470   :  { %4896 = vsyncadd [#allocation3], 4294967168 }
 0x471   :  { %3695 = vsyncpa [#allocation3], 1 }

</bundles_post_ra>
